<compile_context>
chip_gen: v5e
topology: v5e:2x2
jax: 0.10.0
libtpu: 0.0.40
codegen_flags: <defaults>
</compile_context>

<pallas_src>
import jax
import jax.numpy as jnp
from jax import lax
from jax.experimental import pallas as pl
from jax.experimental.pallas import tpu as pltpu


def _round_up(x, m):
    return ((x + m - 1) // m) * m


# --------------------------- parameter preparation ---------------------------
def _pad_gate_weight_T(w, H, Hp):
    """PyTorch gate-stacked (3H, H) weight -> transposed, gate-block-padded (Hp, 3Hp)."""
    w3 = w.reshape(3, H, H)
    wp = jnp.zeros((3, Hp, Hp), w.dtype).at[:, :H, :H].set(w3)
    return wp.transpose(2, 0, 1).reshape(Hp, 3 * Hp)


def _pad_gate_bias(b, H, Hp):
    b3 = b.reshape(3, H)
    bp = jnp.zeros((3, Hp), b.dtype).at[:, :H].set(b3)
    return bp.reshape(1, 3 * Hp)


def prepare_params(raw, H):
    """Pad/transpose PyTorch-layout GRU weights for the Pallas kernels."""
    Hp = _round_up(H, 128)
    V = raw["embedding"].shape[0]
    emb_table = jnp.zeros((V, Hp), jnp.float32).at[:, :H].set(raw["embedding"])

    def proj_bias(b_ih, b_hh):
        # fold b_hh_r / b_hh_z into the projection bias; b_hh_n stays in the loop
        b3 = b_hh.reshape(3, H)
        rz = jnp.concatenate([b3[0], b3[1], jnp.zeros((H,), b_hh.dtype)])
        return _pad_gate_bias(b_ih + rz, H, Hp)

    w_ih_cat = jnp.concatenate(
        [_pad_gate_weight_T(raw["w_ih_f"], H, Hp),
         _pad_gate_weight_T(raw["w_ih_b"], H, Hp)], axis=1)            # (Hp, 6Hp)
    b_proj = jnp.concatenate(
        [proj_bias(raw["b_ih_f"], raw["b_hh_f"]),
         proj_bias(raw["b_ih_b"], raw["b_hh_b"])], axis=1)             # (1, 6Hp)
    w_hh = jnp.stack(
        [_pad_gate_weight_T(raw["w_hh_f"], H, Hp),
         _pad_gate_weight_T(raw["w_hh_b"], H, Hp)], axis=0)            # (2, Hp, 3Hp)

    def pad_vec(v):
        return jnp.zeros((Hp,), v.dtype).at[:H].set(v)

    b_hh_n = jnp.stack([pad_vec(raw["b_hh_f"].reshape(3, H)[2]),
                        pad_vec(raw["b_hh_b"].reshape(3, H)[2])], axis=0)
    b_hh_n = b_hh_n.reshape(2, 1, Hp)                                  # (2, 1, Hp)

    return {"emb_table": emb_table, "w_ih_cat": w_ih_cat, "b_proj": b_proj,
            "w_hh": w_hh, "b_hh_n": b_hh_n}


# ----------------- Pallas kernel 1: batched input projection -----------------
def _proj_kernel(x_ref, w_ref, b_ref, o_ref):
    o_ref[...] = (jnp.dot(x_ref[...], w_ref[...],
                          preferred_element_type=jnp.float32) + b_ref[...])


def _input_projection(x2d, w, b, tm):
    rows_p, Hp = x2d.shape
    N = w.shape[1]
    need = 4 * (2 * tm * Hp + Hp * N + N + 2 * tm * N)   # dbl-buffered in/out + weight
    vmem_limit = int(min(max(2 * need, 32 * 2**20), 56 * 2**20))
    return pl.pallas_call(
        _proj_kernel,
        out_shape=jax.ShapeDtypeStruct((rows_p, N), jnp.float32),
        grid_spec=pltpu.PrefetchScalarGridSpec(
            num_scalar_prefetch=0,
            grid=(rows_p // tm,),
            in_specs=[pl.BlockSpec((tm, Hp), lambda i: (i, 0)),
                      pl.BlockSpec((Hp, N), lambda i: (0, 0)),
                      pl.BlockSpec((1, N), lambda i: (0, 0))],
            out_specs=pl.BlockSpec((tm, N), lambda i: (i, 0)),
        ),
        compiler_params=pltpu.CompilerParams(
            dimension_semantics=("parallel",),
            vmem_limit_bytes=vmem_limit),
    )(x2d, w, b)


# ------ Pallas kernel 2: bidirectional GRU recurrence (grid streamed over T) --
def _bigru_kernel(gif_ref, gib_ref, lens_ref, whh_ref, bhhn_ref,
                  out_ref, hid_ref, h_scr):
    T, Bp, Hp = out_ref.shape
    t_f = pl.program_id(0)            # forward time index
    t_b = T - 1 - t_f                 # backward time index

    @pl.when(t_f == 0)
    def _():
        h_scr[...] = jnp.zeros_like(h_scr)

    lens = lens_ref[...]                                    # (Bp, 1) int32

    def gru_step(h, gi, w_hh, b_hh_n, mask):
        gh = jnp.dot(h, w_hh, preferred_element_type=jnp.float32)       # (Bp, 3Hp)
        r = jax.nn.sigmoid(gi[:, :Hp] + gh[:, :Hp])
        z = jax.nn.sigmoid(gi[:, Hp:2 * Hp] + gh[:, Hp:2 * Hp])
        n = jnp.tanh(gi[:, 2 * Hp:] + r * (gh[:, 2 * Hp:] + b_hh_n))
        h_new = n + z * (h - n)                 # == (1-z)*n + z*h, one less mul
        h_upd = jnp.where(mask, h_new, h)       # packed-seq: hold state when padded
        out = jnp.where(mask, h_upd, 0.0)       # packed-seq: zero padded outputs
        return h_upd, out

    h_f, out_f = gru_step(h_scr[0], gif_ref[0], whh_ref[0], bhhn_ref[0],
                          lens > t_f)
    h_b, out_b = gru_step(h_scr[1], gib_ref[0], whh_ref[1], bhhn_ref[1],
                          lens > t_b)
    h_scr[0] = h_f
    h_scr[1] = h_b

    # In-place fwd+bwd output sum: row t_f gets the fwd value, row t_b gets the
    # bwd value.  In the first half of the grid both target rows are untouched
    # (fresh write, no zero-init pass needed); in the second half they already
    # hold the other direction's value (accumulate); odd-T middle step writes
    # the fused sum once.  No outf scratch, no epilogue add pass.
    @pl.when(2 * t_f < T - 1)
    def _():
        out_ref[t_f] = out_f
        out_ref[t_b] = out_b

    @pl.when(2 * t_f == T - 1)
    def _():
        out_ref[t_f] = out_f + out_b

    @pl.when(2 * t_f > T - 1)
    def _():
        out_ref[t_f] = out_ref[t_f] + out_f
        out_ref[t_b] = out_ref[t_b] + out_b

    @pl.when(t_f == T - 1)
    def _():
        hid_ref[0] = h_f
        hid_ref[1] = h_b


def _bigru(gi, lens2d, w_hh, b_hh_n, T, Bp, Hp):
    G = 3 * Hp
    out_shape = (jax.ShapeDtypeStruct((T, Bp, Hp), jnp.float32),
                 jax.ShapeDtypeStruct((2, Bp, Hp), jnp.float32))

    # Resident: summed outputs, hidden, W_hh, b_hh_n, lens, h scratch.
    # Streamed (double-buffered): the two (Bp, 3Hp) gate views per step.
    resident = (T * Bp * Hp + 2 * Bp * Hp + 2 * Hp * G + 2 * Hp
                + Bp + 2 * Bp * Hp)
    streamed = 2 * 2 * Bp * G
    vmem_need = 4 * (resident + streamed)
    # 56 MiB cap leaves headroom under v7x's 64 MiB physical VMEM; with the
    # streamed design the working set is small so the cap is rarely binding.
    vmem_limit = int(min(max(2 * vmem_need, 32 * 2**20), 56 * 2**20))

    grid_spec = pltpu.PrefetchScalarGridSpec(
        num_scalar_prefetch=0,
        grid=(T,),
        in_specs=[
            # two streamed views of the same gi array (no per-step concat):
            pl.BlockSpec((1, Bp, G), lambda t: (t, 0, 0)),           # fwd gates @ t
            pl.BlockSpec((1, Bp, G), lambda t: (T - 1 - t, 0, 1)),   # bwd gates @ T-1-t
            pl.BlockSpec((Bp, 1), lambda t: (0, 0)),                 # lengths (resident)
            pl.BlockSpec((2, Hp, G), lambda t: (0, 0, 0)),           # W_hh^T fwd/bwd
            pl.BlockSpec((2, 1, Hp), lambda t: (0, 0, 0)),           # b_hh_n
        ],
        out_specs=(
            pl.BlockSpec((T, Bp, Hp), lambda t: (0, 0, 0)),          # summed outputs
            pl.BlockSpec((2, Bp, Hp), lambda t: (0, 0, 0)),          # final hidden
        ),
        scratch_shapes=[pltpu.VMEM((2, Bp, Hp), jnp.float32)],       # carried h states
    )
    return pl.pallas_call(
        _bigru_kernel,
        out_shape=out_shape,
        grid_spec=grid_spec,
        compiler_params=pltpu.CompilerParams(
            dimension_semantics=("arbitrary",),
            vmem_limit_bytes=vmem_limit),
    )(gi, gi, lens2d, w_hh, b_hh_n)


# ------------------------------ EncoderRNN forward ---------------------------
def build_forward(prep, H):
    Hp = prep["w_hh"].shape[1]
    G = 3 * Hp
    emb_table = prep["emb_table"]
    w_ih_cat = prep["w_ih_cat"]
    b_proj = prep["b_proj"]
    w_hh = prep["w_hh"]
    b_hh_n = prep["b_hh_n"]

    @jax.jit
    def forward(input_seq, input_lengths):
        T, B = input_seq.shape
        Bp = _round_up(B, 8)
        seq_p = jnp.pad(input_seq, ((0, 0), (0, Bp - B)))
        lens_p = jnp.pad(input_lengths.astype(jnp.int32), (0, Bp - B))
        lens2d = lens_p.reshape(Bp, 1)

        # TODO(synk): embedding gather stays in XLA.
        emb = emb_table[seq_p]                                  # (T, Bp, Hp)
        rows = T * Bp                                           # multiple of 8
        tm = 512 if rows >= 512 else rows
        rows_p = _round_up(rows, tm)
        x2d = emb.reshape(rows, Hp)
        if rows_p != rows:
            x2d = jnp.pad(x2d, ((0, rows_p - rows), (0, 0)))
        gi = _input_projection(x2d, w_ih_cat, b_proj, tm)[:rows]
        gi = gi.reshape(T, Bp, 2 * G)                           # [fwd gates | bwd gates]

        out_p, hid_p = _bigru(gi, lens2d, w_hh, b_hh_n, T, Bp, Hp)
        return out_p[:, :B, :H], hid_p[:, :B, :H]

    return forward


# ------------------------------ Pure-JAX reference ---------------------------
def encoder_rnn_ref(input_seq, input_lengths, raw):
    emb = raw["embedding"][input_seq]                           # (T, B, H)
    T, B, H = emb.shape
    lens2d = input_lengths.reshape(B, 1)
    h0 = jnp.zeros((B, H), jnp.float32)

    def make_step(w_ih, w_hh, b_ih, b_hh):
        def step(h, t):
            x = emb[t]
            gi = x @ w_ih.T + b_ih
            gh = h @ w_hh.T + b_hh
            i_r, i_z, i_n = jnp.split(gi, 3, axis=-1)
            h_r, h_z, h_n = jnp.split(gh, 3, axis=-1)
            r = jax.nn.sigmoid(i_r + h_r)
            z = jax.nn.sigmoid(i_z + h_z)
            n = jnp.tanh(i_n + r * h_n)
            hn = (1.0 - z) * n + z * h
            mask = lens2d > t
            h2 = jnp.where(mask, hn, h)
            out = jnp.where(mask, h2, 0.0)
            return h2, out
        return step

    ts = jnp.arange(T)
    hf, out_f = lax.scan(make_step(raw["w_ih_f"], raw["w_hh_f"],
                                   raw["b_ih_f"], raw["b_hh_f"]), h0, ts)
    hb, out_b_rev = lax.scan(make_step(raw["w_ih_b"], raw["w_hh_b"],
                                       raw["b_ih_b"], raw["b_hh_b"]), h0, ts[::-1])
    out_b = out_b_rev[::-1]
    return out_f + out_b, jnp.stack([hf, hb])


# ------------------------------------ main ------------------------------------
if __name__ == "__main__":
    T, B, H, V = 8, 4, 32, 20   # small shapes (original module: hidden_size=500)

    key = jax.random.PRNGKey(0)
    ks = jax.random.split(key, 12)
    scale = 1.0 / (H ** 0.5)

    def u(k, shape):
        return jax.random.uniform(k, shape, jnp.float32, -scale, scale)

    raw = {
        "embedding": jax.random.normal(ks[0], (V, H), jnp.float32),
        "w_ih_f": u(ks[1], (3 * H, H)), "w_hh_f": u(ks[2], (3 * H, H)),
        "b_ih_f": u(ks[3], (3 * H,)),   "b_hh_f": u(ks[4], (3 * H,)),
        "w_ih_b": u(ks[5], (3 * H, H)), "w_hh_b": u(ks[6], (3 * H, H)),
        "b_ih_b": u(ks[7], (3 * H,)),   "b_hh_b": u(ks[8], (3 * H,)),
    }

    input_seq = jax.random.randint(ks[9], (T, B), 0, V, dtype=jnp.int32)
    input_lengths = jnp.array([8, 6, 3, 1], dtype=jnp.int32)  # sorted descending

    prep = prepare_params(raw, H)
    forward = build_forward(prep, H)

    outputs, hidden = forward(input_seq, input_lengths)
    outputs = jax.block_until_ready(outputs)
    hidden = jax.block_until_ready(hidden)

    out_ref, hid_ref = encoder_rnn_ref(input_seq, input_lengths, raw)
    assert outputs.shape == (T, B, H) and hidden.shape == (2, B, H)
    assert jnp.allclose(outputs, out_ref, rtol=1e-4, atol=1e-4)
    assert jnp.allclose(hidden, hid_ref, rtol=1e-4, atol=1e-4)

    print("KERNEL_OK")
</pallas_src>

<mosaic_0001>
module attributes {stable_mosaic.version = 11 : i64} {
  func.func @_proj_kernel(%arg0: i32, %arg1: memref<64x128xf32, #tpu.memory_space<vmem>>, %arg2: memref<128x768xf32, #tpu.memory_space<vmem>>, %arg3: memref<1x768xf32, #tpu.memory_space<vmem>>, %arg4: memref<64x768xf32, #tpu.memory_space<vmem>>) attributes {dimension_semantics = [#tpu.dimension_semantics<parallel>], iteration_bounds = array<i64: 1>, scalar_prefetch = 0 : i64, scratch_operands = 0 : i64, tpu.core_type = #tpu.core_type<tc>, window_params = [{transform_indices = @transform_0, window_bounds = array<i64: 64, 128>}, {pipeline_mode = #tpu.pipeline_mode<synchronous>, transform_indices = @transform_1, window_bounds = array<i64: 128, 768>}, {pipeline_mode = #tpu.pipeline_mode<synchronous>, transform_indices = @transform_2, window_bounds = array<i64: 1, 768>}, {transform_indices = @transform_3, window_bounds = array<i64: 64, 768>}]} {
    %c0 = arith.constant 0 : index
    %c0_0 = arith.constant 0 : index
    %0 = vector.load %arg1[%c0, %c0_0] : memref<64x128xf32, #tpu.memory_space<vmem>>, vector<64x128xf32>
    %c0_1 = arith.constant 0 : index
    %c0_2 = arith.constant 0 : index
    %1 = vector.load %arg2[%c0_1, %c0_2] : memref<128x768xf32, #tpu.memory_space<vmem>>, vector<128x768xf32>
    %cst = arith.constant dense<0.000000e+00> : vector<64x768xf32>
    %2 = tpu.matmul %0, %1, %cst {dimension_numbers = #tpu.dot_dimension_numbers<[1], [0], [0], [1], [0, 0, 1, 1], [], []>} : vector<64x128xf32>, vector<128x768xf32>, vector<64x768xf32> -> vector<64x768xf32>
    %c0_3 = arith.constant 0 : index
    %c0_4 = arith.constant 0 : index
    %3 = vector.load %arg3[%c0_3, %c0_4] : memref<1x768xf32, #tpu.memory_space<vmem>>, vector<1x768xf32>
    %4 = vector.broadcast %3 : vector<1x768xf32> to vector<64x768xf32>
    %5 = arith.addf %2, %4 : vector<64x768xf32>
    %c0_5 = arith.constant 0 : index
    %c0_6 = arith.constant 0 : index
    %6 = vector.load %arg4[%c0_5, %c0_6] : memref<64x768xf32, #tpu.memory_space<vmem>>, vector<64x768xf32>
    tpu.vector_store %arg4[%c0_5, %c0_6], %5 {strides = array<i32>} : memref<64x768xf32, #tpu.memory_space<vmem>>, vector<64x768xf32>,
    return
  }
  func.func @transform_0(%arg0: i32) -> (i32, i32) {
    %c0_i32 = arith.constant 0 : i32
    %c0_i32_0 = arith.constant 0 : i32
    return %arg0, %c0_i32 : i32, i32
  }
  func.func @transform_1(%arg0: i32) -> (i32, i32) {
    %c0_i32 = arith.constant 0 : i32
    %c0_i32_0 = arith.constant 0 : i32
    %c0_i32_1 = arith.constant 0 : i32
    return %c0_i32, %c0_i32_0 : i32, i32
  }
  func.func @transform_2(%arg0: i32) -> (i32, i32) {
    %c0_i32 = arith.constant 0 : i32
    %c0_i32_0 = arith.constant 0 : i32
    %c0_i32_1 = arith.constant 0 : i32
    return %c0_i32, %c0_i32_0 : i32, i32
  }
  func.func @transform_3(%arg0: i32) -> (i32, i32) {
    %c0_i32 = arith.constant 0 : i32
    %c0_i32_0 = arith.constant 0 : i32
    return %arg0, %c0_i32 : i32, i32
  }
}

module attributes {stable_mosaic.version = 11 : i64} {
  func.func @_bigru_kernel(%arg0: i32, %arg1: memref<1x8x384xf32, #tpu.memory_space<vmem>>, %arg2: memref<1x8x384xf32, #tpu.memory_space<vmem>>, %arg3: memref<8x1xi32, #tpu.memory_space<vmem>>, %arg4: memref<2x128x384xf32, #tpu.memory_space<vmem>>, %arg5: memref<2x1x128xf32, #tpu.memory_space<vmem>>, %arg6: memref<8x8x128xf32, #tpu.memory_space<vmem>>, %arg7: memref<2x8x128xf32, #tpu.memory_space<vmem>>, %arg8: memref<2x8x128xf32, #tpu.memory_space<vmem>>) attributes {dimension_semantics = [#tpu.dimension_semantics<arbitrary>], iteration_bounds = array<i64: 8>, scalar_prefetch = 0 : i64, scratch_operands = 1 : i64, tpu.core_type = #tpu.core_type<tc>, window_params = [{transform_indices = @transform_0, window_bounds = array<i64: 1, 8, 384>}, {transform_indices = @transform_1, window_bounds = array<i64: 1, 8, 384>}, {pipeline_mode = #tpu.pipeline_mode<synchronous>, transform_indices = @transform_2, window_bounds = array<i64: 8, 1>}, {pipeline_mode = #tpu.pipeline_mode<synchronous>, transform_indices = @transform_3, window_bounds = array<i64: 2, 128, 384>}, {pipeline_mode = #tpu.pipeline_mode<synchronous>, transform_indices = @transform_4, window_bounds = array<i64: 2, 1, 128>}, {pipeline_mode = #tpu.pipeline_mode<synchronous>, transform_indices = @transform_5, window_bounds = array<i64: 8, 8, 128>}, {pipeline_mode = #tpu.pipeline_mode<synchronous>, transform_indices = @transform_6, window_bounds = array<i64: 2, 8, 128>}]} {
    %c7_i32 = arith.constant 7 : i32
    %0 = arith.subi %c7_i32, %arg0 : i32
    %c0_i32 = arith.constant 0 : i32
    %1 = arith.cmpi eq, %arg0, %c0_i32 : i32
    %2 = arith.extui %1 : i1 to i32
    %c0_i32_0 = arith.constant 0 : i32
    %3 = arith.cmpi ne, %2, %c0_i32_0 : i32
    scf.if %3 {
      %cst_48 = arith.constant 0.000000e+00 : f32
      %114 = vector.broadcast %cst_48 : f32 to vector<2x8x128xf32>
      %c0_49 = arith.constant 0 : index
      %c0_50 = arith.constant 0 : index
      %c0_51 = arith.constant 0 : index
      %115 = vector.load %arg8[%c0_49, %c0_50, %c0_51] : memref<2x8x128xf32, #tpu.memory_space<vmem>>, vector<2x8x128xf32>
      tpu.vector_store %arg8[%c0_49, %c0_50, %c0_51], %114 {strides = array<i32>} : memref<2x8x128xf32, #tpu.memory_space<vmem>>, vector<2x8x128xf32>,
    } else {
    }
    %c0 = arith.constant 0 : index
    %c0_1 = arith.constant 0 : index
    %4 = vector.load %arg3[%c0, %c0_1] : memref<8x1xi32, #tpu.memory_space<vmem>>, vector<8x1xi32>
    %c0_2 = arith.constant 0 : index
    %c0_3 = arith.constant 0 : index
    %c0_4 = arith.constant 0 : index
    %5 = vector.load %arg8[%c0_2, %c0_3, %c0_4] : memref<2x8x128xf32, #tpu.memory_space<vmem>>, vector<1x8x128xf32>
    %6 = vector.shape_cast %5 : vector<1x8x128xf32> to vector<8x128xf32>
    %c0_5 = arith.constant 0 : index
    %c0_6 = arith.constant 0 : index
    %c0_7 = arith.constant 0 : index
    %7 = vector.load %arg1[%c0_5, %c0_6, %c0_7] : memref<1x8x384xf32, #tpu.memory_space<vmem>>, vector<1x8x384xf32>
    %8 = vector.shape_cast %7 : vector<1x8x384xf32> to vector<8x384xf32>
    %c0_8 = arith.constant 0 : index
    %c0_9 = arith.constant 0 : index
    %c0_10 = arith.constant 0 : index
    %9 = vector.load %arg4[%c0_8, %c0_9, %c0_10] : memref<2x128x384xf32, #tpu.memory_space<vmem>>, vector<1x128x384xf32>
    %10 = vector.shape_cast %9 : vector<1x128x384xf32> to vector<128x384xf32>
    %c0_11 = arith.constant 0 : index
    %c0_12 = arith.constant 0 : index
    %c0_13 = arith.constant 0 : index
    %11 = vector.load %arg5[%c0_11, %c0_12, %c0_13] : memref<2x1x128xf32, #tpu.memory_space<vmem>>, vector<1x1x128xf32>
    %12 = vector.shape_cast %11 : vector<1x1x128xf32> to vector<1x128xf32>
    %13 = vector.broadcast %arg0 : i32 to vector<8x1xi32>
    %14 = arith.cmpi sgt, %4, %13 : vector<8x1xi32>
    %cst = arith.constant dense<0.000000e+00> : vector<8x384xf32>
    %15 = tpu.matmul %6, %10, %cst {dimension_numbers = #tpu.dot_dimension_numbers<[1], [0], [0], [1], [0, 0, 1, 1], [], []>} : vector<8x128xf32>, vector<128x384xf32>, vector<8x384xf32> -> vector<8x384xf32>
    %16 = vector.extract_strided_slice %8 {offsets = [0, 0], sizes = [8, 128], strides = [1, 1]} : vector<8x384xf32> to vector<8x128xf32>
    %17 = vector.extract_strided_slice %15 {offsets = [0, 0], sizes = [8, 128], strides = [1, 1]} : vector<8x384xf32> to vector<8x128xf32>
    %18 = arith.addf %16, %17 : vector<8x128xf32>
    %19 = arith.negf %18 : vector<8x128xf32>
    %20 = math.exp %19 : vector<8x128xf32>
    %cst_14 = arith.constant 1.000000e+00 : f32
    %21 = vector.broadcast %cst_14 : f32 to vector<8x128xf32>
    %22 = arith.addf %21, %20 : vector<8x128xf32>
    %23 = arith.divf %21, %22 : vector<8x128xf32>
    %24 = vector.extract_strided_slice %8 {offsets = [0, 128], sizes = [8, 128], strides = [1, 1]} : vector<8x384xf32> to vector<8x128xf32>
    %25 = vector.extract_strided_slice %15 {offsets = [0, 128], sizes = [8, 128], strides = [1, 1]} : vector<8x384xf32> to vector<8x128xf32>
    %26 = arith.addf %24, %25 : vector<8x128xf32>
    %27 = arith.negf %26 : vector<8x128xf32>
    %28 = math.exp %27 : vector<8x128xf32>
    %cst_15 = arith.constant 1.000000e+00 : f32
    %29 = vector.broadcast %cst_15 : f32 to vector<8x128xf32>
    %30 = arith.addf %29, %28 : vector<8x128xf32>
    %31 = arith.divf %29, %30 : vector<8x128xf32>
    %32 = vector.extract_strided_slice %8 {offsets = [0, 256], sizes = [8, 128], strides = [1, 1]} : vector<8x384xf32> to vector<8x128xf32>
    %33 = vector.extract_strided_slice %15 {offsets = [0, 256], sizes = [8, 128], strides = [1, 1]} : vector<8x384xf32> to vector<8x128xf32>
    %34 = vector.broadcast %12 : vector<1x128xf32> to vector<8x128xf32>
    %35 = arith.addf %33, %34 : vector<8x128xf32>
    %36 = arith.mulf %23, %35 : vector<8x128xf32>
    %37 = arith.addf %32, %36 : vector<8x128xf32>
    %38 = math.tanh %37 : vector<8x128xf32>
    %39 = arith.subf %6, %38 : vector<8x128xf32>
    %40 = arith.mulf %31, %39 : vector<8x128xf32>
    %41 = arith.addf %38, %40 : vector<8x128xf32>
    %42 = vector.shape_cast %14 : vector<8x1xi1> to vector<8x1xi1>
    %43 = vector.broadcast %42 : vector<8x1xi1> to vector<8x128xi1>
    %44 = arith.select %43, %41, %6 : vector<8x128xi1>, vector<8x128xf32>
    %cst_16 = arith.constant 0.000000e+00 : f32
    %45 = vector.shape_cast %14 : vector<8x1xi1> to vector<8x1xi1>
    %46 = vector.broadcast %45 : vector<8x1xi1> to vector<8x128xi1>
    %47 = vector.broadcast %cst_16 : f32 to vector<8x128xf32>
    %48 = arith.select %46, %44, %47 : vector<8x128xi1>, vector<8x128xf32>
    %c1 = arith.constant 1 : index
    %c0_17 = arith.constant 0 : index
    %c0_18 = arith.constant 0 : index
    %49 = vector.load %arg8[%c1, %c0_17, %c0_18] : memref<2x8x128xf32, #tpu.memory_space<vmem>>, vector<1x8x128xf32>
    %50 = vector.shape_cast %49 : vector<1x8x128xf32> to vector<8x128xf32>
    %c0_19 = arith.constant 0 : index
    %c0_20 = arith.constant 0 : index
    %c0_21 = arith.constant 0 : index
    %51 = vector.load %arg2[%c0_19, %c0_20, %c0_21] : memref<1x8x384xf32, #tpu.memory_space<vmem>>, vector<1x8x384xf32>
    %52 = vector.shape_cast %51 : vector<1x8x384xf32> to vector<8x384xf32>
    %c1_22 = arith.constant 1 : index
    %c0_23 = arith.constant 0 : index
    %c0_24 = arith.constant 0 : index
    %53 = vector.load %arg4[%c1_22, %c0_23, %c0_24] : memref<2x128x384xf32, #tpu.memory_space<vmem>>, vector<1x128x384xf32>
    %54 = vector.shape_cast %53 : vector<1x128x384xf32> to vector<128x384xf32>
    %c1_25 = arith.constant 1 : index
    %c0_26 = arith.constant 0 : index
    %c0_27 = arith.constant 0 : index
    %55 = vector.load %arg5[%c1_25, %c0_26, %c0_27] : memref<2x1x128xf32, #tpu.memory_space<vmem>>, vector<1x1x128xf32>
    %56 = vector.shape_cast %55 : vector<1x1x128xf32> to vector<1x128xf32>
    %57 = vector.broadcast %0 : i32 to vector<8x1xi32>
    %58 = arith.cmpi sgt, %4, %57 : vector<8x1xi32>
    %cst_28 = arith.constant dense<0.000000e+00> : vector<8x384xf32>
    %59 = tpu.matmul %50, %54, %cst_28 {dimension_numbers = #tpu.dot_dimension_numbers<[1], [0], [0], [1], [0, 0, 1, 1], [], []>} : vector<8x128xf32>, vector<128x384xf32>, vector<8x384xf32> -> vector<8x384xf32>
    %60 = vector.extract_strided_slice %52 {offsets = [0, 0], sizes = [8, 128], strides = [1, 1]} : vector<8x384xf32> to vector<8x128xf32>
    %61 = vector.extract_strided_slice %59 {offsets = [0, 0], sizes = [8, 128], strides = [1, 1]} : vector<8x384xf32> to vector<8x128xf32>
    %62 = arith.addf %60, %61 : vector<8x128xf32>
    %63 = arith.negf %62 : vector<8x128xf32>
    %64 = math.exp %63 : vector<8x128xf32>
    %cst_29 = arith.constant 1.000000e+00 : f32
    %65 = vector.broadcast %cst_29 : f32 to vector<8x128xf32>
    %66 = arith.addf %65, %64 : vector<8x128xf32>
    %67 = arith.divf %65, %66 : vector<8x128xf32>
    %68 = vector.extract_strided_slice %52 {offsets = [0, 128], sizes = [8, 128], strides = [1, 1]} : vector<8x384xf32> to vector<8x128xf32>
    %69 = vector.extract_strided_slice %59 {offsets = [0, 128], sizes = [8, 128], strides = [1, 1]} : vector<8x384xf32> to vector<8x128xf32>
    %70 = arith.addf %68, %69 : vector<8x128xf32>
    %71 = arith.negf %70 : vector<8x128xf32>
    %72 = math.exp %71 : vector<8x128xf32>
    %cst_30 = arith.constant 1.000000e+00 : f32
    %73 = vector.broadcast %cst_30 : f32 to vector<8x128xf32>
    %74 = arith.addf %73, %72 : vector<8x128xf32>
    %75 = arith.divf %73, %74 : vector<8x128xf32>
    %76 = vector.extract_strided_slice %52 {offsets = [0, 256], sizes = [8, 128], strides = [1, 1]} : vector<8x384xf32> to vector<8x128xf32>
    %77 = vector.extract_strided_slice %59 {offsets = [0, 256], sizes = [8, 128], strides = [1, 1]} : vector<8x384xf32> to vector<8x128xf32>
    %78 = vector.broadcast %56 : vector<1x128xf32> to vector<8x128xf32>
    %79 = arith.addf %77, %78 : vector<8x128xf32>
    %80 = arith.mulf %67, %79 : vector<8x128xf32>
    %81 = arith.addf %76, %80 : vector<8x128xf32>
    %82 = math.tanh %81 : vector<8x128xf32>
    %83 = arith.subf %50, %82 : vector<8x128xf32>
    %84 = arith.mulf %75, %83 : vector<8x128xf32>
    %85 = arith.addf %82, %84 : vector<8x128xf32>
    %86 = vector.shape_cast %58 : vector<8x1xi1> to vector<8x1xi1>
    %87 = vector.broadcast %86 : vector<8x1xi1> to vector<8x128xi1>
    %88 = arith.select %87, %85, %50 : vector<8x128xi1>, vector<8x128xf32>
    %cst_31 = arith.constant 0.000000e+00 : f32
    %89 = vector.shape_cast %58 : vector<8x1xi1> to vector<8x1xi1>
    %90 = vector.broadcast %89 : vector<8x1xi1> to vector<8x128xi1>
    %91 = vector.broadcast %cst_31 : f32 to vector<8x128xf32>
    %92 = arith.select %90, %88, %91 : vector<8x128xi1>, vector<8x128xf32>
    %c0_32 = arith.constant 0 : index
    %c0_33 = arith.constant 0 : index
    %c0_34 = arith.constant 0 : index
    %93 = vector.load %arg8[%c0_32, %c0_33, %c0_34] : memref<2x8x128xf32, #tpu.memory_space<vmem>>, vector<1x8x128xf32>
    %94 = vector.shape_cast %93 : vector<1x8x128xf32> to vector<8x128xf32>
    %95 = vector.shape_cast %44 : vector<8x128xf32> to vector<1x8x128xf32>
    tpu.vector_store %arg8[%c0_32, %c0_33, %c0_34], %95 {strides = array<i32>} : memref<2x8x128xf32, #tpu.memory_space<vmem>>, vector<1x8x128xf32>,
    %c1_35 = arith.constant 1 : index
    %c0_36 = arith.constant 0 : index
    %c0_37 = arith.constant 0 : index
    %96 = vector.load %arg8[%c1_35, %c0_36, %c0_37] : memref<2x8x128xf32, #tpu.memory_space<vmem>>, vector<1x8x128xf32>
    %97 = vector.shape_cast %96 : vector<1x8x128xf32> to vector<8x128xf32>
    %98 = vector.shape_cast %88 : vector<8x128xf32> to vector<1x8x128xf32>
    tpu.vector_store %arg8[%c1_35, %c0_36, %c0_37], %98 {strides = array<i32>} : memref<2x8x128xf32, #tpu.memory_space<vmem>>, vector<1x8x128xf32>,
    %c2_i32 = arith.constant 2 : i32
    %99 = arith.muli %c2_i32, %arg0 : i32
    %c7_i32_38 = arith.constant 7 : i32
    %100 = arith.cmpi slt, %99, %c7_i32_38 : i32
    %101 = arith.extui %100 : i1 to i32
    %c0_i32_39 = arith.constant 0 : i32
    %102 = arith.cmpi ne, %101, %c0_i32_39 : i32
    scf.if %102 {
      %114 = arith.index_cast %arg0 : i32 to index
      %c0_48 = arith.constant 0 : index
      %c0_49 = arith.constant 0 : index
      %115 = vector.load %arg6[%114, %c0_48, %c0_49] : memref<8x8x128xf32, #tpu.memory_space<vmem>>, vector<1x8x128xf32>
      %116 = vector.shape_cast %115 : vector<1x8x128xf32> to vector<8x128xf32>
      %117 = vector.shape_cast %48 : vector<8x128xf32> to vector<1x8x128xf32>
      tpu.vector_store %arg6[%114, %c0_48, %c0_49], %117 {strides = array<i32>} : memref<8x8x128xf32, #tpu.memory_space<vmem>>, vector<1x8x128xf32>,
      %118 = arith.index_cast %0 : i32 to index
      %c0_50 = arith.constant 0 : index
      %c0_51 = arith.constant 0 : index
      %119 = vector.load %arg6[%118, %c0_50, %c0_51] : memref<8x8x128xf32, #tpu.memory_space<vmem>>, vector<1x8x128xf32>
      %120 = vector.shape_cast %119 : vector<1x8x128xf32> to vector<8x128xf32>
      %121 = vector.shape_cast %92 : vector<8x128xf32> to vector<1x8x128xf32>
      tpu.vector_store %arg6[%118, %c0_50, %c0_51], %121 {strides = array<i32>} : memref<8x8x128xf32, #tpu.memory_space<vmem>>, vector<1x8x128xf32>,
    } else {
    }
    %c2_i32_40 = arith.constant 2 : i32
    %103 = arith.muli %c2_i32_40, %arg0 : i32
    %c7_i32_41 = arith.constant 7 : i32
    %104 = arith.cmpi eq, %103, %c7_i32_41 : i32
    %105 = arith.extui %104 : i1 to i32
    %c0_i32_42 = arith.constant 0 : i32
    %106 = arith.cmpi ne, %105, %c0_i32_42 : i32
    scf.if %106 {
      %114 = arith.addf %48, %92 : vector<8x128xf32>
      %115 = arith.index_cast %arg0 : i32 to index
      %c0_48 = arith.constant 0 : index
      %c0_49 = arith.constant 0 : index
      %116 = vector.load %arg6[%115, %c0_48, %c0_49] : memref<8x8x128xf32, #tpu.memory_space<vmem>>, vector<1x8x128xf32>
      %117 = vector.shape_cast %116 : vector<1x8x128xf32> to vector<8x128xf32>
      %118 = vector.shape_cast %114 : vector<8x128xf32> to vector<1x8x128xf32>
      tpu.vector_store %arg6[%115, %c0_48, %c0_49], %118 {strides = array<i32>} : memref<8x8x128xf32, #tpu.memory_space<vmem>>, vector<1x8x128xf32>,
    } else {
    }
    %c2_i32_43 = arith.constant 2 : i32
    %107 = arith.muli %c2_i32_43, %arg0 : i32
    %c7_i32_44 = arith.constant 7 : i32
    %108 = arith.cmpi sgt, %107, %c7_i32_44 : i32
    %109 = arith.extui %108 : i1 to i32
    %c0_i32_45 = arith.constant 0 : i32
    %110 = arith.cmpi ne, %109, %c0_i32_45 : i32
    scf.if %110 {
      %114 = arith.index_cast %arg0 : i32 to index
      %c0_48 = arith.constant 0 : index
      %c0_49 = arith.constant 0 : index
      %115 = vector.load %arg6[%114, %c0_48, %c0_49] : memref<8x8x128xf32, #tpu.memory_space<vmem>>, vector<1x8x128xf32>
      %116 = vector.shape_cast %115 : vector<1x8x128xf32> to vector<8x128xf32>
      %117 = arith.addf %116, %48 : vector<8x128xf32>
      %118 = arith.index_cast %arg0 : i32 to index
      %c0_50 = arith.constant 0 : index
      %c0_51 = arith.constant 0 : index
      %119 = vector.load %arg6[%118, %c0_50, %c0_51] : memref<8x8x128xf32, #tpu.memory_space<vmem>>, vector<1x8x128xf32>
      %120 = vector.shape_cast %119 : vector<1x8x128xf32> to vector<8x128xf32>
      %121 = vector.shape_cast %117 : vector<8x128xf32> to vector<1x8x128xf32>
      tpu.vector_store %arg6[%118, %c0_50, %c0_51], %121 {strides = array<i32>} : memref<8x8x128xf32, #tpu.memory_space<vmem>>, vector<1x8x128xf32>,
      %122 = arith.index_cast %0 : i32 to index
      %c0_52 = arith.constant 0 : index
      %c0_53 = arith.constant 0 : index
      %123 = vector.load %arg6[%122, %c0_52, %c0_53] : memref<8x8x128xf32, #tpu.memory_space<vmem>>, vector<1x8x128xf32>
      %124 = vector.shape_cast %123 : vector<1x8x128xf32> to vector<8x128xf32>
      %125 = arith.addf %124, %92 : vector<8x128xf32>
      %126 = arith.index_cast %0 : i32 to index
      %c0_54 = arith.constant 0 : index
      %c0_55 = arith.constant 0 : index
      %127 = vector.load %arg6[%126, %c0_54, %c0_55] : memref<8x8x128xf32, #tpu.memory_space<vmem>>, vector<1x8x128xf32>
      %128 = vector.shape_cast %127 : vector<1x8x128xf32> to vector<8x128xf32>
      %129 = vector.shape_cast %125 : vector<8x128xf32> to vector<1x8x128xf32>
      tpu.vector_store %arg6[%126, %c0_54, %c0_55], %129 {strides = array<i32>} : memref<8x8x128xf32, #tpu.memory_space<vmem>>, vector<1x8x128xf32>,
    } else {
    }
    %c7_i32_46 = arith.constant 7 : i32
    %111 = arith.cmpi eq, %arg0, %c7_i32_46 : i32
    %112 = arith.extui %111 : i1 to i32
    %c0_i32_47 = arith.constant 0 : i32
    %113 = arith.cmpi ne, %112, %c0_i32_47 : i32
    scf.if %113 {
      %c0_48 = arith.constant 0 : index
      %c0_49 = arith.constant 0 : index
      %c0_50 = arith.constant 0 : index
      %114 = vector.load %arg7[%c0_48, %c0_49, %c0_50] : memref<2x8x128xf32, #tpu.memory_space<vmem>>, vector<1x8x128xf32>
      %115 = vector.shape_cast %114 : vector<1x8x128xf32> to vector<8x128xf32>
      %116 = vector.shape_cast %44 : vector<8x128xf32> to vector<1x8x128xf32>
      tpu.vector_store %arg7[%c0_48, %c0_49, %c0_50], %116 {strides = array<i32>} : memref<2x8x128xf32, #tpu.memory_space<vmem>>, vector<1x8x128xf32>,
      %c1_51 = arith.constant 1 : index
      %c0_52 = arith.constant 0 : index
      %c0_53 = arith.constant 0 : index
      %117 = vector.load %arg7[%c1_51, %c0_52, %c0_53] : memref<2x8x128xf32, #tpu.memory_space<vmem>>, vector<1x8x128xf32>
      %118 = vector.shape_cast %117 : vector<1x8x128xf32> to vector<8x128xf32>
      %119 = vector.shape_cast %88 : vector<8x128xf32> to vector<1x8x128xf32>
      tpu.vector_store %arg7[%c1_51, %c0_52, %c0_53], %119 {strides = array<i32>} : memref<2x8x128xf32, #tpu.memory_space<vmem>>, vector<1x8x128xf32>,
    } else {
    }
    return
  }
  func.func @transform_0(%arg0: i32) -> (i32, i32, i32) {
    %c0_i32 = arith.constant 0 : i32
    %c0_i32_0 = arith.constant 0 : i32
    %c0_i32_1 = arith.constant 0 : i32
    return %arg0, %c0_i32, %c0_i32_0 : i32, i32, i32
  }
  func.func @transform_1(%arg0: i32) -> (i32, i32, i32) {
    %c7_i32 = arith.constant 7 : i32
    %0 = arith.subi %c7_i32, %arg0 : i32
    %c0_i32 = arith.constant 0 : i32
    %c1_i32 = arith.constant 1 : i32
    %c0_i32_0 = arith.constant 0 : i32
    return %0, %c0_i32, %c1_i32 : i32, i32, i32
  }
  func.func @transform_2(%arg0: i32) -> (i32, i32) {
    %c0_i32 = arith.constant 0 : i32
    %c0_i32_0 = arith.constant 0 : i32
    %c0_i32_1 = arith.constant 0 : i32
    return %c0_i32, %c0_i32_0 : i32, i32
  }
  func.func @transform_3(%arg0: i32) -> (i32, i32, i32) {
    %c0_i32 = arith.constant 0 : i32
    %c0_i32_0 = arith.constant 0 : i32
    %c0_i32_1 = arith.constant 0 : i32
    %c0_i32_2 = arith.constant 0 : i32
    return %c0_i32, %c0_i32_0, %c0_i32_1 : i32, i32, i32
  }
  func.func @transform_4(%arg0: i32) -> (i32, i32, i32) {
    %c0_i32 = arith.constant 0 : i32
    %c0_i32_0 = arith.constant 0 : i32
    %c0_i32_1 = arith.constant 0 : i32
    %c0_i32_2 = arith.constant 0 : i32
    return %c0_i32, %c0_i32_0, %c0_i32_1 : i32, i32, i32
  }
  func.func @transform_5(%arg0: i32) -> (i32, i32, i32) {
    %c0_i32 = arith.constant 0 : i32
    %c0_i32_0 = arith.constant 0 : i32
    %c0_i32_1 = arith.constant 0 : i32
    %c0_i32_2 = arith.constant 0 : i32
    return %c0_i32, %c0_i32_0, %c0_i32_1 : i32, i32, i32
  }
  func.func @transform_6(%arg0: i32) -> (i32, i32, i32) {
    %c0_i32 = arith.constant 0 : i32
    %c0_i32_0 = arith.constant 0 : i32
    %c0_i32_1 = arith.constant 0 : i32
    %c0_i32_2 = arith.constant 0 : i32
    return %c0_i32, %c0_i32_0, %c0_i32_1 : i32, i32, i32
  }
}

</mosaic_0001>

<bundles_post_ra>
// kernel: forward.3
= control target key start
LH: loop header
LB: loop body
LE: loop exit
PB: predicated region body
PF: predicated region fallthrough
CT: control target
= control target key end

     0   :  { %12 = vsyncpa [#allocation4], 0  ;;  %s912_s21 = smov 0   ;;  %s1019_s0 = inlined_call_operand.vmem [shape: f32[8,8,768], index: 0, kind: input, shape index: {}, may-alias: {0,1}]   ;;  %s1020_s1 = inlined_call_operand.vmem [shape: f32[8,8,768], index: 1, kind: input, shape index: {}, may-alias: {0,1}]   ;;  %s1021_s2 = inlined_call_operand.vmem [shape: s32[8,1], index: 2, kind: input, shape index: {}]   ;;  %s1022_s3 = inlined_call_operand.hbm [shape: f32[2,128,384], index: 3, kind: input, shape index: {}]   ;;  %s1023_s4 = inlined_call_operand.vmem [shape: f32[2,1,128], index: 4, kind: input, shape index: {}]   ;;  %s1024_s5 = inlined_call_operand.vmem [shape: f32[8,8,128], index: 5, kind: output, shape index: {0}]   ;;  %s1025_s6 = inlined_call_operand.vmem [shape: f32[2,8,128], index: 6, kind: output, shape index: {1}]  }
   0x1 LB: > { %s196_s24 = sshll.u32 %s1022_s3, 4  ;;  %s921_s25 = sadd.s32 4294967295, %s870_s21   ;;  %s870_s21 = sphi %s912_s21, %s18_s21   ;;  %s197_s24 = int_to_ptr.hbm [resolvable:$true] %s196_s24 }
   0x2   : > { %p754_p0 = scmp.ge.s32.totalorder %s870_s21, 1  ;;  %p182_p1 = scmp.lt.s32.totalorder %s870_s21, 9 }
   0x3   : > { %p755_p2 = scmp.ne.s32.totalorder %s921_s25, 0  ;;  %p792_p3 = scmp.eq.s32.totalorder %s921_s25, 0 }
   0x4   : > { %p183_p4 = pnand %p754_p0, %p182_p1  ;;  %s872_s26 = smov [#allocation3]  }
   0x5   : > { %s198_s27 = sshll.u32 %s872_s26, 4  ;;  %s873_s28 = smov 384   ;;  %s199_s27 = int_to_ptr.vmem [resolvable:$true] %s198_s27 }
   0x6   : > { %p788_p5 = pneg %p183_p4  ;;  %s874_s29 = smov 24  }
   0x7   : > { %236 = sbr.rel (%p183_p4) target bundleno = 295 (0x127), region = 40 }
   0x8   : > { %p789_p6 = pnand %p792_p3, %p788_p5 }
   0xa   : > { %791 = dma.hbm_to_vmem [thread:$0]  (!%p789_p6), %s197_s24, 12288, %s199_s27, [#allocation4], %s873_s28, %s873_s28, %s874_s29  }
   0xc   : > { %865 = dma.done.wait (%p792_p3), [#allocation4], 12288  }
   0xd   : > { %867 = vsyncadd (%p792_p3), [#allocation4], 4294955008  ;;  %p269_p7 = scmp.lt.s32.totalorder %s921_s25, 7  ;;  %s929_s30 = ssub.s32 7, %s921_s25 }
   0xe   : > { %p275_p8 = scmp.lt.s32.totalorder %s929_s30, 7 }
   0xf   : > { %s270_s7 = scalar_select %p269_p7, %s921_s25, 7 }
  0x10   : > { %s276_s8 = scalar_select %p275_p8, %s929_s30, 7 }
  0x11   : > { %s783_s9 = smul.u32 48, %s270_s7 }
  0x12   : > { %s760_s10 = smul.u32 48, %s276_s8 }
  0x13   : > { %s937_s13 = scalar_lea.vmem %s1019_s0, %s783_s9  ;;  %286 = sbr.rel (%p755_p2) target bundleno = 27 (0x1b), region = 48 }
  0x14   : > { %s942_s16 = scalar_lea.vmem %s1020_s1, %s760_s10 }
  0x18   : > { %v875_v0 = vmov 0.0  }
  0x19   : > { %287 = vst [vmem:[#allocation2] sm:$0xff] %v875_v0 }
  0x1a   : > { %288 = vst [vmem:[#allocation2 + $0x8] sm:$0xff] %v875_v0 }
  0x1b PF: > { %v339_v1 = vld [vmem:[#allocation3 + $0x168] sm:$0xff]  ;;  %v336_v3 = vld [vmem:[#allocation3 + $0x150] sm:$0xff]  ;;  %v333_v6 = vld [vmem:[#allocation3 + $0x138] sm:$0xff]  ;;  %s962_s19 = sshll.u32 %s921_s25, 1 }
  0x1c   : > { %v513_v2 = vld [vmem:[#allocation3 + $0x2e8] sm:$0xff]  ;;  %345 = vmatpush.msra.mxu0 %v339_v1  ;;  %v510_v4 = vld [vmem:[#allocation3 + $0x2d0] sm:$0xff]  ;;  %v507_v7 = vld [vmem:[#allocation3 + $0x2b8] sm:$0xff]  ;;  %p771_p9 = scmp.ge.s32.totalorder %s962_s19, 7 }
  0x1d   : > { %520 = vmatpush.msra.mxu3 %v513_v2  ;;  %v340_v5 = vld [vmem:[#allocation3 + $0x170] sm:$0xff]  ;;  %v337_v8 = vld [vmem:[#allocation3 + $0x158] sm:$0xff]  ;;  %v334_v9 = vld [vmem:[#allocation3 + $0x140] sm:$0xff]  ;;  %s772_s26 = sshll.u32 (!%p771_p9), %s921_s25, 3  ;;  %s773_s27 = sshll.u32 (!%p771_p9), %s929_s30, 3 }
  0x1e   : > { %365 = vmatpush.msra.mxu1 %v340_v5  ;;  %346 = vmatpush.msra.mxu0 %v336_v3  ;;  %v330_v10 = vld [vmem:[#allocation3 + $0x120] sm:$0xff]  ;;  %v331_v12 = vld [vmem:[#allocation3 + $0x128] sm:$0xff]  ;;  %v328_v15 = vld [vmem:[#allocation3 + $0x110] sm:$0xff]  ;;  %s645_s7 = scalar_lea.vmem (!%p771_p9), %s1024_s5, %s772_s26  ;;  %s648_s10 = scalar_lea.vmem (!%p771_p9), %s1024_s5, %s773_s27 }
  0x1f   : > { %521 = vmatpush.msra.mxu3 %v510_v4  ;;  %v504_v11 = vld [vmem:[#allocation3 + $0x2a0] sm:$0xff]  ;;  %v327_v13 = vld [vmem:[#allocation3 + $0x108] sm:$0xff]  ;;  %v324_v16 = vld [vmem:[#allocation3 + $0xf0] sm:$0xff]  ;;  %v343_v4 = vstv %s921_s25 }
  0x20   : > { %366 = vmatpush.msra.mxu1 %v337_v8  ;;  %347 = vmatpush.msra.mxu0 %v333_v6  ;;  %v501_v14 = vld [vmem:[#allocation3 + $0x288] sm:$0xff]  ;;  %v498_v17 = vld [vmem:[#allocation3 + $0x270] sm:$0xff]  ;;  %v325_v18 = vld [vmem:[#allocation3 + $0xf8] sm:$0xff] }
  0x21   : > { %522 = vmatpush.msra.mxu3 %v507_v7  ;;  %v321_v19 = vld [vmem:[#allocation3 + $0xd8] sm:$0xff]  ;;  %v322_v21 = vld [vmem:[#allocation3 + $0xe0] sm:$0xff]  ;;  %v319_v25 = vld [vmem:[#allocation3 + $0xc8] sm:$0xff] }
  0x22   : > { %367 = vmatpush.msra.mxu1 %v334_v9  ;;  %348 = vmatpush.msra.mxu0 %v330_v10  ;;  %v495_v20 = vld [vmem:[#allocation3 + $0x258] sm:$0xff]  ;;  %v318_v23 = vld [vmem:[#allocation3 + $0xc0] sm:$0xff]  ;;  %v315_v27 = vld [vmem:[#allocation3 + $0xa8] sm:$0xff]  ;;  %v876_v9 = vmov 0  }
  0x23   : > { %523 = vmatpush.msra.mxu3 %v504_v11  ;;  %v341_v22 = vld [vmem:[#allocation3 + $0x178] sm:$0xff]  ;;  %v492_v24 = vld [vmem:[#allocation3 + $0x240] sm:$0xff]  ;;  %v489_v28 = vld [vmem:[#allocation3 + $0x228] sm:$0xff]  ;;  %807 = vset.pattern.permute.xlu0 %v876_v9 }
  0x24   : > { %368 = vmatpush.msra.mxu1 %v331_v12  ;;  %349 = vmatpush.msra.mxu0 %v327_v13  ;;  %v338_v26 = vld [vmem:[#allocation3 + $0x160] sm:$0xff]  ;;  %v335_v29 = vld [vmem:[#allocation3 + $0x148] sm:$0xff]  ;;  %v316_v30 = vld [vmem:[#allocation3 + $0xb0] sm:$0xff] }
  0x25   : > { %524 = vmatpush.msra.mxu3 %v501_v14  ;;  %385 = vmatpush.msra.mxu2 %v341_v22  ;;  %v332_v31 = vld [vmem:[#allocation3 + $0x130] sm:$0xff]  ;;  %v313_v34 = vld [vmem:[#allocation3 + $0x98] sm:$0xff]  ;;  %v310_v38 = vld [vmem:[#allocation3 + $0x80] sm:$0xff]  ;;  %v518_v14 = vstv %s929_s30 }
  0x26   : > { %369 = vmatpush.msra.mxu1 %v328_v15  ;;  %350 = vmatpush.msra.mxu0 %v324_v16  ;;  %v312_v32 = vld [vmem:[#allocation3 + $0x90] sm:$0xff]  ;;  %v329_v35 = vld [vmem:[#allocation3 + $0x118] sm:$0xff]  ;;  %v326_v39 = vld [vmem:[#allocation3 + $0x100] sm:$0xff] }
  0x27   : > { %525 = vmatpush.msra.mxu3 %v498_v17  ;;  %386 = vmatpush.msra.mxu2 %v338_v26  ;;  %v486_v33 = vld [vmem:[#allocation3 + $0x210] sm:$0xff]  ;;  %v309_v36 = vld [vmem:[#allocation3 + $0x78] sm:$0xff]  ;;  %v306_v40 = vld [vmem:[#allocation3 + $0x60] sm:$0xff] }
  0x28   : > { %370 = vmatpush.msra.mxu1 %v325_v18  ;;  %351 = vmatpush.msra.mxu0 %v321_v19  ;;  %v483_v37 = vld [vmem:[#allocation3 + $0x1f8] sm:$0xff]  ;;  %v480_v41 = vld [vmem:[#allocation3 + $0x1e0] sm:$0xff]  ;;  %v307_v42 = vld [vmem:[#allocation3 + $0x68] sm:$0xff] }
  0x29   : > { %526 = vmatpush.msra.mxu3 %v495_v20  ;;  %387 = vmatpush.msra.mxu2 %v335_v29  ;;  %v323_v43 = vld [vmem:[#allocation3 + $0xe8] sm:$0xff]  ;;  %v304_v46 = vld [vmem:[#allocation3 + $0x50] sm:$0xff]  ;;  %v301_v50 = vld [vmem:[#allocation3 + $0x38] sm:$0xff] }
  0x2a   : > { %371 = vmatpush.msra.mxu1 %v322_v21  ;;  %352 = vmatpush.msra.mxu0 %v318_v23  ;;  %v303_v44 = vld [vmem:[#allocation3 + $0x48] sm:$0xff]  ;;  %v320_v47 = vld [vmem:[#allocation3 + $0xd0] sm:$0xff]  ;;  %v317_v51 = vld [vmem:[#allocation3 + $0xb8] sm:$0xff] }
  0x2b   : > { %527 = vmatpush.msra.mxu3 %v492_v24  ;;  %388 = vmatpush.msra.mxu2 %v332_v31  ;;  %v477_v45 = vld [vmem:[#allocation3 + $0x1c8] sm:$0xff]  ;;  %v300_v48 = vld [vmem:[#allocation3 + $0x30] sm:$0xff]  ;;  %v297_v52 = vld [vmem:[#allocation3 + $0x18] sm:$0xff] }
  0x2c   : > { %372 = vmatpush.msra.mxu1 %v319_v25  ;;  %353 = vmatpush.msra.mxu0 %v315_v27  ;;  %v474_v49 = vld [vmem:[#allocation3 + $0x1b0] sm:$0xff]  ;;  %v471_v53 = vld [vmem:[#allocation3 + $0x198] sm:$0xff]  ;;  %v298_v54 = vld [vmem:[#allocation3 + $0x20] sm:$0xff] }
  0x2d   : > { %528 = vmatpush.msra.mxu3 %v489_v28  ;;  %389 = vmatpush.msra.mxu2 %v329_v35  ;;  %v314_v55 = vld [vmem:[#allocation3 + $0xa0] sm:$0xff]  ;;  %v946_v58 = vld [vmem:[#allocation2 + $0x8] sm:$0xff]  ;;  %v514_v59 = vld [vmem:[#allocation3 + $0x2f0] sm:$0xff] }
  0x2e   : > { %373 = vmatpush.msra.mxu1 %v316_v30  ;;  %354 = vmatpush.msra.mxu0 %v312_v32  ;;  %v294_v56 = vld [vmem:[#allocation3] sm:$0xff]  ;;  %v948_v60 = vld [vmem:[#allocation2] sm:$0xff]  ;;  %v295_v61 = vld [vmem:[#allocation3 + $0x8] sm:$0xff] }
  0x2f   : > { %529 = vmatpush.msra.mxu3 %v486_v33  ;;  %390 = vmatpush.msra.mxu2 %v326_v39  ;;  %v468_v57 = vld [vmem:[#allocation3 + $0x180] sm:$0xff]  ;;  %v511_v62 = vld [vmem:[#allocation3 + $0x2d8] sm:$0xff]  ;;  %v311_v0 = vld [vmem:[#allocation3 + $0x88] sm:$0xff] }
  0x30   : > { %374 = vmatpush.msra.mxu1 %v313_v34  ;;  %355 = vmatpush.msra.mxu0 %v309_v36  ;;  %v515_v63 = vld [vmem:[#allocation3 + $0x2f8] sm:$0xff]  ;;  %v508_v1 = vld [vmem:[#allocation3 + $0x2c0] sm:$0xff]  ;;  %v289_v3 = vld [vmem:[%s1021_s2] sm:$0xff] }
  0x31   : > { %530 = vmatpush.msra.mxu3 %v483_v37  ;;  %391 = vmatpush.msra.mxu2 %v323_v43  ;;  %v512_v2 = vld [vmem:[#allocation3 + $0x2e0] sm:$0xff]  ;;  %v308_v5 = vld [vmem:[#allocation3 + $0x70] sm:$0xff]  ;;  %vm344_vm0 = vcmp.gt.s32.totalorder %v289_v3, %v343_v4  ;;  %v505_v6 = vld [vmem:[#allocation3 + $0x2a8] sm:$0xff]  ;;  %vm519_vm1 = vcmp.gt.s32.totalorder %v289_v3, %v518_v14 }
  0x32   : > { %375 = vmatpush.msra.mxu1 %v310_v38  ;;  %356 = vmatpush.msra.mxu0 %v306_v40  ;;  %v509_v7 = vld [vmem:[#allocation3 + $0x2c8] sm:$0xff]  ;;  %v305_v8 = vld [vmem:[#allocation3 + $0x58] sm:$0xff]  ;;  %v455_v10 = vsel %vm344_vm0, 1, %v876_v9  ;;  %v502_v11 = vld [vmem:[#allocation3 + $0x290] sm:$0xff]  ;;  %v630_v23 = vsel %vm519_vm1, 1, %v876_v9 }
  0x33   : > { %531 = vmatpush.msra.mxu3 %v480_v41  ;;  %392 = vmatpush.msra.mxu2 %v320_v47  ;;  %v506_v12 = vld [vmem:[#allocation3 + $0x2b0] sm:$0xff]  ;;  %v302_v13 = vld [vmem:[#allocation3 + $0x40] sm:$0xff]  ;;  %v499_v15 = vld [vmem:[#allocation3 + $0x278] sm:$0xff] }
  0x34   : > { %376 = vmatpush.msra.mxu1 %v307_v42  ;;  %357 = vmatpush.msra.mxu0 %v303_v44  ;;  %v503_v16 = vld [vmem:[#allocation3 + $0x298] sm:$0xff]  ;;  %v299_v17 = vld [vmem:[#allocation3 + $0x28] sm:$0xff]  ;;  %v496_v18 = vld [vmem:[#allocation3 + $0x260] sm:$0xff] }
  0x35   : > { %532 = vmatpush.msra.mxu3 %v477_v45  ;;  %393 = vmatpush.msra.mxu2 %v317_v51  ;;  %v500_v19 = vld [vmem:[#allocation3 + $0x280] sm:$0xff]  ;;  %v296_v20 = vld [vmem:[#allocation3 + $0x10] sm:$0xff]  ;;  %v493_v21 = vld [vmem:[#allocation3 + $0x248] sm:$0xff] }
  0x36   : > { %377 = vmatpush.msra.mxu1 %v304_v46  ;;  %358 = vmatpush.msra.mxu0 %v300_v48  ;;  %v497_v22 = vld [vmem:[#allocation3 + $0x268] sm:$0xff]  ;;  %v490_v24 = vld [vmem:[#allocation3 + $0x230] sm:$0xff]  ;;  %v487_v26 = vld [vmem:[#allocation3 + $0x218] sm:$0xff] }
  0x37   : > { %533 = vmatpush.msra.mxu3 %v474_v49  ;;  %394 = vmatpush.msra.mxu2 %v314_v55  ;;  %v494_v25 = vld [vmem:[#allocation3 + $0x250] sm:$0xff]  ;;  %v491_v27 = vld [vmem:[#allocation3 + $0x238] sm:$0xff]  ;;  %v484_v28 = vld [vmem:[#allocation3 + $0x200] sm:$0xff] }
  0x38   : > { %378 = vmatpush.msra.mxu1 %v301_v50  ;;  %359 = vmatpush.msra.mxu0 %v297_v52  ;;  %v488_v29 = vld [vmem:[#allocation3 + $0x220] sm:$0xff]  ;;  %v481_v30 = vld [vmem:[#allocation3 + $0x1e8] sm:$0xff]  ;;  %v478_v32 = vld [vmem:[#allocation3 + $0x1d0] sm:$0xff] }
  0x39   : > { %534 = vmatpush.msra.mxu3 %v471_v53  ;;  %395 = vmatpush.msra.mxu2 %v311_v0  ;;  %v485_v31 = vld [vmem:[#allocation3 + $0x208] sm:$0xff]  ;;  %v482_v33 = vld [vmem:[#allocation3 + $0x1f0] sm:$0xff]  ;;  %v475_v34 = vld [vmem:[#allocation3 + $0x1b8] sm:$0xff] }
  0x3a   : > { %379 = vmatpush.msra.mxu1 %v298_v54  ;;  %360 = vmatpush.msra.mxu0 %v294_v56  ;;  %v479_v35 = vld [vmem:[#allocation3 + $0x1d8] sm:$0xff]  ;;  %v472_v36 = vld [vmem:[#allocation3 + $0x1a0] sm:$0xff]  ;;  %v469_v38 = vld [vmem:[#allocation3 + $0x188] sm:$0xff] }
  0x3b   : > { %535 = vmatpush.msra.mxu3 %v468_v57  ;;  %361 = vmatmul.f32.vlgmr.msra.gmra.mxu0 %v948_v60  ;;  %v476_v37 = vld [vmem:[#allocation3 + $0x1c0] sm:$0xff]  ;;  %v473_v39 = vld [vmem:[#allocation3 + $0x1a8] sm:$0xff]  ;;  %v470_v40 = vld [vmem:[#allocation3 + $0x190] sm:$0xff] }
  0x3c   : > { %536 = vmatmul.f32.vlgmr.msra.gmra.mxu3 %v946_v58  ;;  %540 = vmatpush.msrb.mxu0 %v514_v59  ;;  %v291_v41 = vld [vmem:[%s937_s13] sm:$0xff]  ;;  %v292_v43 = vld [vmem:[%s937_s13 + $0x8] sm:$0xff]  ;;  %v764_v47 = vld [vmem:[%s942_s16 + $0x18] sm:$0xff] }
  0x3d   : > { %380 = vmatpush.msra.mxu1 %v295_v61  ;;  %396 = vmatpush.msra.mxu2 %v308_v5  ;;  %v808_v4 = vld [vmem:[%s1023_s4] ss:$0 sm:$0xff] }
  0x3e   : > { %541 = vmatpush.msrb.mxu0 %v511_v62  ;;  %381 = vmatmul.f32.vlgmr.msra.gmra.mxu1 %v948_v60 }
  0x3f   : > { %560 = vmatpush.msrb.mxu1 %v515_v63  ;;  %397 = vmatpush.msra.mxu2 %v305_v8 }
  0x40   : > { %542 = vmatpush.msrb.mxu0 %v508_v1  ;;  %457 = vperm.xlu0 %807, %v455_v10  }
  0x41   : > { %561 = vmatpush.msrb.mxu1 %v512_v2  ;;  %398 = vmatpush.msra.mxu2 %v302_v13  ;;  %v765_v13 = vld [vmem:[%s942_s16 + $0x20] sm:$0xff] }
  0x42   : > { %543 = vmatpush.msrb.mxu0 %v505_v6 }
  0x43   : > { %562 = vmatpush.msrb.mxu1 %v509_v7  ;;  %399 = vmatpush.msra.mxu2 %v299_v17 }
  0x44   : > { %544 = vmatpush.msrb.mxu0 %v502_v11 }
  0x45   : > { %563 = vmatpush.msrb.mxu1 %v506_v12  ;;  %400 = vmatpush.msra.mxu2 %v296_v20 }
  0x46   : > { %545 = vmatpush.msrb.mxu0 %v499_v15  ;;  %401 = vmatmul.f32.vlgmr.msra.gmra.mxu2 %v948_v60 }
  0x47   : > { %564 = vmatpush.msrb.mxu1 %v503_v16  ;;  %v293_v16 = vld [vmem:[%s937_s13 + $0x10] sm:$0xff] }
  0x48   : > { %546 = vmatpush.msrb.mxu0 %v496_v18  ;;  %632 = vperm.xlu0 %807, %v630_v23  }
  0x49   : > { %565 = vmatpush.msrb.mxu1 %v500_v19 }
  0x4a   : > { %547 = vmatpush.msrb.mxu0 %v493_v21 }
  0x4b   : > { %566 = vmatpush.msrb.mxu1 %v497_v22 }
  0x4c   : > { %548 = vmatpush.msrb.mxu0 %v490_v24 }
  0x4d   : > { %567 = vmatpush.msrb.mxu1 %v494_v25 }
  0x4e   : > { %549 = vmatpush.msrb.mxu0 %v487_v26 }
  0x4f   : > { %568 = vmatpush.msrb.mxu1 %v491_v27 }
  0x50   : > { %550 = vmatpush.msrb.mxu0 %v484_v28 }
  0x51   : > { %569 = vmatpush.msrb.mxu1 %v488_v29 }
  0x52   : > { %551 = vmatpush.msrb.mxu0 %v481_v30 }
  0x53   : > { %570 = vmatpush.msrb.mxu1 %v485_v31 }
  0x54   : > { %552 = vmatpush.msrb.mxu0 %v478_v32  ;;  %v809_v32 = vld [vmem:[%s1023_s4 + $0x1] ss:$0 sm:$0xff] }
  0x55   : > { %571 = vmatpush.msrb.mxu1 %v482_v33 }
  0x56   : > { %553 = vmatpush.msrb.mxu0 %v475_v34 }
  0x57   : > { %572 = vmatpush.msrb.mxu1 %v479_v35 }
  0x58   : > { %554 = vmatpush.msrb.mxu0 %v472_v36 }
  0x59   : > { %573 = vmatpush.msrb.mxu1 %v476_v37 }
  0x5a   : > { %555 = vmatpush.msrb.mxu0 %v469_v38 }
  0x5b   : > { %574 = vmatpush.msrb.mxu1 %v473_v39  ;;  %556 = vmatmul.f32.vlgmr.msrb.gmra.mxu0 %v946_v58 }
  0x5d   : > { %575 = vmatpush.msrb.mxu1 %v470_v40 }
  0x5e   : > { %576 = vmatmul.f32.vlgmr.msrb.gmra.mxu1 %v946_v58 }
  0xb8   : > { %v362_v42 = vpop.f32.mrf.mxu0 }
  0xb9   : > { %v405_v44 = vadd.f32 %v362_v42, %v291_v41 }
  0xbb   : > { %v382_v45 = vpop.f32.mrf.mxu1  ;;  %v762_v46 = vmul.f32 -1.442695, %v405_v44  ;;  %v458_v44 = vpop.permute.xlu0 %457 }
  0xbc   : > { %v425_v48 = vadd.f32 %v382_v45, %v292_v43  ;;  %vm459_vm14 = vcmp.eq.s32.totalorder %v458_v44, 1 }
  0xbd   : > { %810 = vpow2.f32 %v762_v46 }
  0xbe   : > { %v763_v50 = vmul.f32 -1.442695, %v425_v48 }
  0xbf   : > { %v537_v49 = vpop.f32.mrf.mxu3 }
  0xc0   : > { %v580_v51 = vadd.f32 %v764_v47, %v537_v49  ;;  %812 = vpow2.f32 %v763_v50  ;;  %v766_v47 = vld [vmem:[%s942_s16 + $0x28] sm:$0xff] }
  0xc2   : > { %v768_v52 = vmul.f32 -1.442695, %v580_v51 }
  0xc3   : > { %v811_v53 = vpop.eup %810 }
  0xc4   : > { %814 = vpow2.f32 %v768_v52  ;;  %v409_v54 = vadd.f32 1.0, %v811_v53 }
  0xc6   : > { %v813_v55 = vpop.eup %812  ;;  %816 = vrcp.f32 %v409_v54  ;;  %vm415_vm2 = vweird.f32 %v409_v54  ;;  %v421_v0 = vand.u32 2147483648, %v409_v54  ;;  %v419_v3 = vand.u32 2147483647, %v409_v54 }
  0xc7   : > { %v429_v56 = vadd.f32 1.0, %v813_v55 }
  0xc8   : > { %v422_v9 = vor.u32 1.1754944e-38, %v421_v0  ;;  %vm420_vm5 = vcmp.eq.f32.partialorder %v419_v3, 8.507059e+37  ;;  %v633_v3 = vpop.permute.xlu0 %632 }
  0xc9   : > { %818 = vrcp.f32 %v429_v56  ;;  %v402_v5 = vpop.f32.mrf.mxu2  ;;  %vm435_vm8 = vweird.f32 %v429_v56  ;;  %v441_v24 = vand.u32 2147483648, %v429_v56  ;;  %v439_v31 = vand.u32 2147483647, %v429_v56 }
  0xca   : > { %v815_v57 = vpop.eup %814  ;;  %v448_v12 = vadd.f32 %v808_v4, %v402_v5 }
  0xcb   : > { %v584_v59 = vadd.f32 1.0, %v815_v57  ;;  %v442_v36 = vor.u32 1.1754944e-38, %v441_v24  ;;  %vm440_vm13 = vcmp.eq.f32.partialorder %v439_v31, 8.507059e+37 }
  0xcc   : > { %v817_v61 = vpop.eup %816 }
  0xcd   : > { %820 = vrcp.f32 %v584_v59  ;;  %v411_v62 = vmul.f32 %v817_v61, %v409_v54  ;;  %vm416_vm3 = vweird.f32 %v817_v61  ;;  %vm590_vm6 = vweird.f32 %v584_v59 }
  0xce   : > { %vm417_vm4 = vmor %vm415_vm2, %vm416_vm3  ;;  %v596_v23 = vand.u32 2147483648, %v584_v59  ;;  %v594_v28 = vand.u32 2147483647, %v584_v59  ;;  %vm634_vm3 = vcmp.eq.s32.totalorder %v633_v3, 1 }
  0xcf   : > { %v819_v63 = vpop.eup %818  ;;  %v412_v2 = vsub.f32 1.0, %v411_v62 }
  0xd0   : > { %v431_v1 = vmul.f32 %v819_v63, %v429_v56  ;;  %vm436_vm9 = vweird.f32 %v819_v63  ;;  %v597_v34 = vor.u32 1.1754944e-38, %v596_v23  ;;  %vm595_vm12 = vcmp.eq.f32.partialorder %v594_v28, 8.507059e+37 }
  0xd1   : > { %v413_v7 = vmul.f32 %v817_v61, %v412_v2  ;;  %vm437_vm11 = vmor %vm435_vm8, %vm436_vm9 }
  0xd2   : > { %v432_v8 = vsub.f32 1.0, %v431_v1 }
  0xd3   : > { %v821_v6 = vpop.eup %820  ;;  %v414_v11 = vadd.f32 %v817_v61, %v413_v7 }
  0xd4   : > { %v586_v10 = vmul.f32 %v821_v6, %v584_v59  ;;  %v433_v20 = vmul.f32 %v819_v63, %v432_v8  ;;  %vm591_vm7 = vweird.f32 %v821_v6 }
  0xd5   : > { %v418_v15 = vsel %vm417_vm4, %v817_v61, %v414_v11  ;;  %vm972_vm10 = vmor %vm590_vm6, %vm591_vm7 }
  0xd6   : > { %v587_v14 = vsub.f32 1.0, %v586_v10  ;;  %v423_v17 = vsel %vm420_vm5, %v422_v9, %v418_v15  ;;  %v434_v30 = vadd.f32 %v819_v63, %v433_v20 }
  0xd7   : > { %v449_v21 = vmul.f32 %v448_v12, %v423_v17 }
  0xd8   : > { %v557_v18 = vpop.f32.mrf.mxu0  ;;  %v588_v19 = vmul.f32 %v821_v6, %v587_v14  ;;  %v438_v37 = vsel %vm437_vm11, %v819_v63, %v434_v30 }
  0xd9   : > { %v600_v22 = vadd.f32 %v765_v13, %v557_v18  ;;  %v450_v25 = vadd.f32 %v449_v21, %v293_v16  ;;  %v443_v41 = vsel %vm440_vm13, %v442_v36, %v438_v37 }
  0xda   : > { %v589_v27 = vadd.f32 %v821_v6, %v588_v19 }
  0xdb   : > { %v769_v26 = vmul.f32 -1.442695, %v600_v22  ;;  %822 = vtanh.f32 %v450_v25  ;;  %v577_v33 = vpop.f32.mrf.mxu1 }
  0xdc   : > { %v593_v35 = vsel %vm972_vm10, %v821_v6, %v589_v27  ;;  %v623_v38 = vadd.f32 %v809_v32, %v577_v33 }
  0xdd   : > { %824 = vpow2.f32 %v769_v26  ;;  %v598_v39 = vsel %vm595_vm12, %v597_v34, %v593_v35 }
  0xde   : > { %v624_v46 = vmul.f32 %v623_v38, %v598_v39 }
  0xe0   : > { %v625_v50 = vadd.f32 %v766_v47, %v624_v46 }
  0xe1   : > { %v823_v40 = vpop.eup %822 }
  0xe2   : > { %v452_v43 = vsub.f32 %v948_v60, %v823_v40 }
  0xe3   : > { %v825_v42 = vpop.eup %824 }
  0xe4   : > { %v604_v45 = vadd.f32 1.0, %v825_v42  ;;  %v453_v48 = vmul.f32 %v452_v43, %v443_v41 }
  0xe6   : > { %826 = vrcp.f32 %v604_v45  ;;  %v454_v49 = vadd.f32 %v823_v40, %v453_v48  ;;  %v616_v56 = vand.u32 2147483648, %v604_v45  ;;  %v614_v59 = vand.u32 2147483647, %v604_v45 }
  0xe7   : > { %828 = vtanh.f32 %v625_v50  ;;  %vm610_vm0 = vweird.f32 %v604_v45 }
  0xe8   : > { %v460_v51 = vsel %vm459_vm14, %v454_v49, %v948_v60  ;;  %v461_v52 = vsel %vm459_vm14, %v454_v49, 0.0  ;;  %v617_v63 = vor.u32 1.1754944e-38, %v616_v56  ;;  %vm615_vm2 = vcmp.eq.f32.partialorder %v614_v59, 8.507059e+37 }
  0xe9   : > { %637 = vst [vmem:[#allocation2] sm:$0xff] %v460_v51 }
  0xec   : > { %v827_v53 = vpop.eup %826 }
  0xed   : > { %v606_v54 = vmul.f32 %v827_v53, %v604_v45  ;;  %vm611_vm15 = vweird.f32 %v827_v53  ;;  %v829_v61 = vpop.eup %828 }
  0xee   : > { %vm612_vm1 = vmor %vm610_vm0, %vm611_vm15  ;;  %v627_v1 = vsub.f32 %v946_v58, %v829_v61 }
  0xef   : > { %v607_v55 = vsub.f32 1.0, %v606_v54 }
  0xf1   : > { %v608_v57 = vmul.f32 %v827_v53, %v607_v55 }
  0xf3   : > { %v609_v62 = vadd.f32 %v827_v53, %v608_v57 }
  0xf5   : > { %v613_v0 = vsel %vm612_vm1, %v827_v53, %v609_v62 }
  0xf6   : > { %v618_v60 = vsel %vm615_vm2, %v617_v63, %v613_v0 }
  0xf7   : > { %v628_v2 = vmul.f32 %v627_v1, %v618_v60 }
  0xf8   : > { %643 = sbr.rel (%p771_p9) target bundleno = 255 (0xff), region = 52 }
  0xf9   : > { %v629_v4 = vadd.f32 %v829_v61, %v628_v2 }
  0xfb   : > { %v635_v5 = vsel %vm634_vm3, %v629_v4, %v946_v58  ;;  %v636_v6 = vsel %vm634_vm3, %v629_v4, 0.0 }
  0xfc   : > { %638 = vst [vmem:[#allocation2 + $0x8] sm:$0xff] %v635_v5 }
  0xfd   : > { %646 = vst [vmem:[%s645_s7] sm:$0xff] %v461_v52 }
  0xfe   : > { %649 = vst [vmem:[%s648_s10] sm:$0xff] %v636_v6 }
  0xff PF: > { %p774_p10 = scmp.ne.s32.totalorder %s962_s19, 7 }
 0x100   : > { %s775_s11 = sshll.u32 (!%p774_p10), %s921_s25, 3 }
 0x101   : > { %653 = sbr.rel (%p774_p10) target bundleno = 265 (0x109), region = 56  ;;  %s656_s14 = scalar_lea.vmem (!%p774_p10), %s1024_s5, %s775_s11 }
 0x106   : > { %v654_v58 = vadd.f32 %v636_v6, %v461_v52 }
 0x108   : > { %657 = vst [vmem:[%s656_s14] sm:$0xff] %v654_v58 }
 0x109 PF: > { %p776_p11 = scmp.le.s32.totalorder %s962_s19, 7 }
 0x10a   : > { %s777_s15 = sshll.u32 (!%p776_p11), %s921_s25, 3  ;;  %s778_s20 = sshll.u32 (!%p776_p11), %s929_s30, 3 }
 0x10b   : > { %661 = sbr.rel (%p776_p11) target bundleno = 286 (0x11e), region = 60  ;;  %s663_s18 = scalar_lea.vmem (!%p776_p11), %s1024_s5, %s777_s15 }
 0x10c   : > { %s668_s24 = scalar_lea.vmem (!%p776_p11), %s1024_s5, %s778_s20 }
 0x110   : > { %v664_v7 = vld [vmem:[%s663_s18] sm:$0xff] }
 0x111   : > { %v665_v8 = vadd.f32 %v664_v7, %v461_v52 }
 0x113   : > { %666 = vst [vmem:[%s663_s18] sm:$0xff] %v665_v8 }
 0x11a   : > { %v669_v9 = vld [vmem:[%s668_s24] sm:$0xff] }
 0x11b   : > { %v670_v10 = vadd.f32 %v669_v9, %v636_v6 }
 0x11d   : > { %671 = vst [vmem:[%s668_s24] sm:$0xff] %v670_v10 }
 0x11e PF: > { %p779_p12 = scmp.ne.s32.totalorder %s921_s25, 7 }
 0x120   : > { %675 = sbr.rel (%p779_p12) target bundleno = 295 (0x127), region = 64 }
 0x125   : > { %676 = vst [vmem:[%s1025_s6] sm:$0xff] %v460_v51 }
 0x126   : > { %780 = vst [vmem:[%s1025_s6 + $0x8] sm:$0xff] %v635_v5 }
 0x127 PF: > { %s18_s21 = sadd.s32 1, %s870_s21  }
 0x128   : > { %p15_p13 = scmp.ge.s32.totalorder %s18_s21, 10  }
 0x12a   :  { %17 = sbr.rel (!%p15_p13) target bundleno = 1 (0x1), region = 111 }
 0x12f   :  { %696 = vsyncpa [#allocation4], 1 }
 0x130   :  { %698 = vsyncpa [#allocation4 + $0x1], 1 }

// kernel: forward.2
= control target key start
LH: loop header
LB: loop body
LE: loop exit
PB: predicated region body
PF: predicated region fallthrough
CT: control target
= control target key end

     0   :  { %8 = vsyncpa [#allocation3], 0  ;;  %s508_s15 = smov [#allocation2]   ;;  %s509_s17 = smov 768   ;;  %s801_s0 = inlined_call_operand.vmem [shape: f32[64,128], index: 0, kind: input, shape index: {}]   ;;  %s802_s1 = inlined_call_operand.hbm [shape: f32[128,768], index: 1, kind: input, shape index: {}]   ;;  %s803_s2 = inlined_call_operand.vmem [shape: f32[1,768], index: 2, kind: input, shape index: {}]   ;;  %s804_s3 = inlined_call_operand.vmem [shape: f32[64,768], index: 3, kind: output, shape index: {}]  }
   0x1   :  { %s15_s14 = sshll.u32 %s802_s1, 4  ;;  %s17_s16 = sshll.u32 %s508_s15, 4  ;;  %s16_s14 = int_to_ptr.hbm [resolvable:$true] %s15_s14  ;;  %s18_s16 = int_to_ptr.vmem [resolvable:$true] %s17_s16 }
   0x2   :  { %s510_s18 = smov 48  }
   0x3   :  { %23 = dma.hbm_to_vmem [thread:$0]  %s16_s14, 12288, %s18_s16, [#allocation3], %s509_s17, %s509_s17, %s510_s18  }
   0x4   :  { %506 = dma.done.wait [#allocation3], 12288  }
   0x5   :  { %507 = vsyncadd [#allocation3], 4294955008  ;;  %v128_v0 = vld [vmem:[#allocation2 + $0x2d0] sm:$0xff]  ;;  %v129_v1 = vld [vmem:[#allocation2 + $0x2d8] sm:$0xff] }
   0x6   :  { %v122_v2 = vld [vmem:[#allocation2 + $0x2a0] sm:$0xff]  ;;  %447 = vmatpush.msra.mxu2 %v128_v0  ;;  %463 = vmatpush.msra.mxu3 %v129_v1  ;;  %v123_v3 = vld [vmem:[#allocation2 + $0x2a8] sm:$0xff]  ;;  %v116_v4 = vld [vmem:[#allocation2 + $0x270] sm:$0xff] }
   0x7   :  { %v117_v5 = vld [vmem:[#allocation2 + $0x278] sm:$0xff]  ;;  %148 = vmatpush.msra.mxu0 %v128_v0  ;;  %189 = vmatpush.msra.mxu1 %v129_v1  ;;  %v110_v6 = vld [vmem:[#allocation2 + $0x240] sm:$0xff]  ;;  %v111_v7 = vld [vmem:[#allocation2 + $0x248] sm:$0xff] }
   0x8   :  { %448 = vmatpush.msra.mxu2 %v122_v2  ;;  %464 = vmatpush.msra.mxu3 %v123_v3  ;;  %v104_v8 = vld [vmem:[#allocation2 + $0x210] sm:$0xff]  ;;  %v105_v9 = vld [vmem:[#allocation2 + $0x218] sm:$0xff]  ;;  %v98_v10 = vld [vmem:[#allocation2 + $0x1e0] sm:$0xff] }
   0x9   :  { %149 = vmatpush.msra.mxu0 %v122_v2  ;;  %190 = vmatpush.msra.mxu1 %v123_v3  ;;  %v99_v11 = vld [vmem:[#allocation2 + $0x1e8] sm:$0xff]  ;;  %v92_v12 = vld [vmem:[#allocation2 + $0x1b0] sm:$0xff]  ;;  %v93_v13 = vld [vmem:[#allocation2 + $0x1b8] sm:$0xff] }
   0xa   :  { %449 = vmatpush.msra.mxu2 %v116_v4  ;;  %465 = vmatpush.msra.mxu3 %v117_v5  ;;  %v86_v14 = vld [vmem:[#allocation2 + $0x180] sm:$0xff]  ;;  %v87_v15 = vld [vmem:[#allocation2 + $0x188] sm:$0xff]  ;;  %v80_v16 = vld [vmem:[#allocation2 + $0x150] sm:$0xff] }
   0xb   :  { %150 = vmatpush.msra.mxu0 %v116_v4  ;;  %191 = vmatpush.msra.mxu1 %v117_v5  ;;  %v81_v17 = vld [vmem:[#allocation2 + $0x158] sm:$0xff]  ;;  %v74_v18 = vld [vmem:[#allocation2 + $0x120] sm:$0xff]  ;;  %v75_v19 = vld [vmem:[#allocation2 + $0x128] sm:$0xff] }
   0xc   :  { %450 = vmatpush.msra.mxu2 %v110_v6  ;;  %466 = vmatpush.msra.mxu3 %v111_v7  ;;  %v68_v20 = vld [vmem:[#allocation2 + $0xf0] sm:$0xff]  ;;  %v69_v21 = vld [vmem:[#allocation2 + $0xf8] sm:$0xff]  ;;  %v62_v22 = vld [vmem:[#allocation2 + $0xc0] sm:$0xff] }
   0xd   :  { %151 = vmatpush.msra.mxu0 %v110_v6  ;;  %192 = vmatpush.msra.mxu1 %v111_v7  ;;  %v63_v23 = vld [vmem:[#allocation2 + $0xc8] sm:$0xff]  ;;  %v56_v24 = vld [vmem:[#allocation2 + $0x90] sm:$0xff]  ;;  %v57_v25 = vld [vmem:[#allocation2 + $0x98] sm:$0xff] }
   0xe   :  { %451 = vmatpush.msra.mxu2 %v104_v8  ;;  %467 = vmatpush.msra.mxu3 %v105_v9  ;;  %v50_v26 = vld [vmem:[#allocation2 + $0x60] sm:$0xff]  ;;  %v51_v27 = vld [vmem:[#allocation2 + $0x68] sm:$0xff]  ;;  %v44_v28 = vld [vmem:[#allocation2 + $0x30] sm:$0xff] }
   0xf   :  { %152 = vmatpush.msra.mxu0 %v104_v8  ;;  %193 = vmatpush.msra.mxu1 %v105_v9  ;;  %v45_v29 = vld [vmem:[#allocation2 + $0x38] sm:$0xff]  ;;  %v38_v30 = vld [vmem:[#allocation2] sm:$0xff]  ;;  %v39_v31 = vld [vmem:[#allocation2 + $0x8] sm:$0xff] }
  0x10   :  { %452 = vmatpush.msra.mxu2 %v98_v10  ;;  %468 = vmatpush.msra.mxu3 %v99_v11  ;;  %v537_v32 = vld [vmem:[%s801_s0 + $0x20] sm:$0xff]  ;;  %v131_v34 = vld [vmem:[#allocation2 + $0x2e8] sm:$0xff]  ;;  %v124_v35 = vld [vmem:[#allocation2 + $0x2b0] sm:$0xff] }
  0x11   :  { %153 = vmatpush.msra.mxu0 %v98_v10  ;;  %194 = vmatpush.msra.mxu1 %v99_v11  ;;  %v130_v33 = vld [vmem:[#allocation2 + $0x2e0] sm:$0xff]  ;;  %v125_v36 = vld [vmem:[#allocation2 + $0x2b8] sm:$0xff]  ;;  %v119_v39 = vld [vmem:[#allocation2 + $0x288] sm:$0xff] }
  0x12   :  { %453 = vmatpush.msra.mxu2 %v92_v12  ;;  %469 = vmatpush.msra.mxu3 %v93_v13  ;;  %v544_v37 = vld [vmem:[%s801_s0] sm:$0xff]  ;;  %v132_v40 = vld [vmem:[#allocation2 + $0x2f0] sm:$0xff]  ;;  %v133_v41 = vld [vmem:[#allocation2 + $0x2f8] sm:$0xff] }
  0x13   :  { %154 = vmatpush.msra.mxu0 %v92_v12  ;;  %195 = vmatpush.msra.mxu1 %v93_v13  ;;  %v118_v38 = vld [vmem:[#allocation2 + $0x280] sm:$0xff]  ;;  %v112_v42 = vld [vmem:[#allocation2 + $0x250] sm:$0xff]  ;;  %v113_v43 = vld [vmem:[#allocation2 + $0x258] sm:$0xff] }
  0x14   :  { %454 = vmatpush.msra.mxu2 %v86_v14  ;;  %470 = vmatpush.msra.mxu3 %v87_v15  ;;  %v551_v44 = vld [vmem:[%s801_s0 + $0x28] sm:$0xff]  ;;  %v106_v45 = vld [vmem:[#allocation2 + $0x220] sm:$0xff]  ;;  %v100_v49 = vld [vmem:[#allocation2 + $0x1f0] sm:$0xff] }
  0x15   :  { %155 = vmatpush.msra.mxu0 %v86_v14  ;;  %196 = vmatpush.msra.mxu1 %v87_v15  ;;  %v107_v46 = vld [vmem:[#allocation2 + $0x228] sm:$0xff]  ;;  %v126_v47 = vld [vmem:[#allocation2 + $0x2c0] sm:$0xff]  ;;  %v101_v50 = vld [vmem:[#allocation2 + $0x1f8] sm:$0xff] }
  0x16   :  { %455 = vmatpush.msra.mxu2 %v80_v16  ;;  %471 = vmatpush.msra.mxu3 %v81_v17  ;;  %v127_v48 = vld [vmem:[#allocation2 + $0x2c8] sm:$0xff]  ;;  %v120_v51 = vld [vmem:[#allocation2 + $0x290] sm:$0xff]  ;;  %v121_v52 = vld [vmem:[#allocation2 + $0x298] sm:$0xff] }
  0x17   :  { %156 = vmatpush.msra.mxu0 %v80_v16  ;;  %197 = vmatpush.msra.mxu1 %v81_v17  ;;  %v94_v53 = vld [vmem:[#allocation2 + $0x1c0] sm:$0xff]  ;;  %v95_v54 = vld [vmem:[#allocation2 + $0x1c8] sm:$0xff]  ;;  %v88_v58 = vld [vmem:[#allocation2 + $0x190] sm:$0xff] }
  0x18   :  { %456 = vmatpush.msra.mxu2 %v74_v18  ;;  %472 = vmatpush.msra.mxu3 %v75_v19  ;;  %v114_v55 = vld [vmem:[#allocation2 + $0x260] sm:$0xff]  ;;  %v115_v56 = vld [vmem:[#allocation2 + $0x268] sm:$0xff]  ;;  %v89_v59 = vld [vmem:[#allocation2 + $0x198] sm:$0xff] }
  0x19   :  { %157 = vmatpush.msra.mxu0 %v74_v18  ;;  %198 = vmatpush.msra.mxu1 %v75_v19  ;;  %v558_v57 = vld [vmem:[%s801_s0 + $0x8] sm:$0xff]  ;;  %v108_v60 = vld [vmem:[#allocation2 + $0x230] sm:$0xff]  ;;  %v109_v61 = vld [vmem:[#allocation2 + $0x238] sm:$0xff] }
  0x1a   :  { %457 = vmatpush.msra.mxu2 %v68_v20  ;;  %473 = vmatpush.msra.mxu3 %v69_v21  ;;  %v565_v62 = vld [vmem:[%s801_s0 + $0x30] sm:$0xff]  ;;  %v82_v63 = vld [vmem:[#allocation2 + $0x160] sm:$0xff]  ;;  %v83_v0 = vld [vmem:[#allocation2 + $0x168] sm:$0xff] }
  0x1b   :  { %158 = vmatpush.msra.mxu0 %v68_v20  ;;  %199 = vmatpush.msra.mxu1 %v69_v21  ;;  %v102_v1 = vld [vmem:[#allocation2 + $0x200] sm:$0xff]  ;;  %v103_v2 = vld [vmem:[#allocation2 + $0x208] sm:$0xff]  ;;  %v76_v3 = vld [vmem:[#allocation2 + $0x130] sm:$0xff] }
  0x1c   :  { %458 = vmatpush.msra.mxu2 %v62_v22  ;;  %474 = vmatpush.msra.mxu3 %v63_v23  ;;  %v77_v4 = vld [vmem:[#allocation2 + $0x138] sm:$0xff]  ;;  %v96_v5 = vld [vmem:[#allocation2 + $0x1d0] sm:$0xff]  ;;  %v70_v7 = vld [vmem:[#allocation2 + $0x100] sm:$0xff] }
  0x1d   :  { %159 = vmatpush.msra.mxu0 %v62_v22  ;;  %200 = vmatpush.msra.mxu1 %v63_v23  ;;  %v97_v6 = vld [vmem:[#allocation2 + $0x1d8] sm:$0xff]  ;;  %v71_v8 = vld [vmem:[#allocation2 + $0x108] sm:$0xff]  ;;  %v90_v9 = vld [vmem:[#allocation2 + $0x1a0] sm:$0xff] }
  0x1e   :  { %459 = vmatpush.msra.mxu2 %v56_v24  ;;  %475 = vmatpush.msra.mxu3 %v57_v25  ;;  %v91_v10 = vld [vmem:[#allocation2 + $0x1a8] sm:$0xff]  ;;  %v572_v11 = vld [vmem:[%s801_s0 + $0x10] sm:$0xff]  ;;  %v65_v13 = vld [vmem:[#allocation2 + $0xd8] sm:$0xff] }
  0x1f   :  { %160 = vmatpush.msra.mxu0 %v56_v24  ;;  %201 = vmatpush.msra.mxu1 %v57_v25  ;;  %v64_v12 = vld [vmem:[#allocation2 + $0xd0] sm:$0xff]  ;;  %v85_v15 = vld [vmem:[#allocation2 + $0x178] sm:$0xff]  ;;  %v58_v17 = vld [vmem:[#allocation2 + $0xa0] sm:$0xff] }
  0x20   :  { %460 = vmatpush.msra.mxu2 %v50_v26  ;;  %476 = vmatpush.msra.mxu3 %v51_v27  ;;  %v84_v14 = vld [vmem:[#allocation2 + $0x170] sm:$0xff]  ;;  %v579_v16 = vld [vmem:[%s801_s0 + $0x38] sm:$0xff]  ;;  %v59_v18 = vld [vmem:[#allocation2 + $0xa8] sm:$0xff] }
  0x21   :  { %161 = vmatpush.msra.mxu0 %v50_v26  ;;  %202 = vmatpush.msra.mxu1 %v51_v27  ;;  %v78_v19 = vld [vmem:[#allocation2 + $0x140] sm:$0xff]  ;;  %v79_v20 = vld [vmem:[#allocation2 + $0x148] sm:$0xff]  ;;  %v52_v21 = vld [vmem:[#allocation2 + $0x70] sm:$0xff] }
  0x22   :  { %461 = vmatpush.msra.mxu2 %v44_v28  ;;  %477 = vmatpush.msra.mxu3 %v45_v29  ;;  %v53_v22 = vld [vmem:[#allocation2 + $0x78] sm:$0xff]  ;;  %v72_v23 = vld [vmem:[#allocation2 + $0x110] sm:$0xff]  ;;  %v46_v25 = vld [vmem:[#allocation2 + $0x40] sm:$0xff] }
  0x23   :  { %162 = vmatpush.msra.mxu0 %v44_v28  ;;  %203 = vmatpush.msra.mxu1 %v45_v29  ;;  %v73_v24 = vld [vmem:[#allocation2 + $0x118] sm:$0xff]  ;;  %v47_v26 = vld [vmem:[#allocation2 + $0x48] sm:$0xff]  ;;  %v66_v27 = vld [vmem:[#allocation2 + $0xe0] sm:$0xff] }
  0x24   :  { %462 = vmatpush.msra.mxu2 %v38_v30  ;;  %478 = vmatpush.msra.mxu3 %v39_v31  ;;  %v67_v28 = vld [vmem:[#allocation2 + $0xe8] sm:$0xff]  ;;  %v33_v29 = vld [vmem:[%s801_s0 + $0x18] sm:$0xff] }
  0x25   :  { %176 = vmatmul.f32.vlgmr.msra.gmra.mxu2 %v537_v32  ;;  %217 = vmatmul.f32.vlgmr.msra.gmra.mxu3 %v537_v32 }
  0x26   :  { %230 = vmatpush.msrb.mxu2 %v130_v33  ;;  %271 = vmatpush.msrb.mxu3 %v131_v34  ;;  %v60_v33 = vld [vmem:[#allocation2 + $0xb0] sm:$0xff]  ;;  %v61_v34 = vld [vmem:[#allocation2 + $0xb8] sm:$0xff] }
  0x27   :  { %163 = vmatpush.msra.mxu0 %v38_v30  ;;  %204 = vmatpush.msra.mxu1 %v39_v31  ;;  %v40_v30 = vld [vmem:[#allocation2 + $0x10] sm:$0xff]  ;;  %v41_v31 = vld [vmem:[#allocation2 + $0x18] sm:$0xff] }
  0x28   :  { %231 = vmatpush.msrb.mxu2 %v124_v35  ;;  %272 = vmatpush.msrb.mxu3 %v125_v36  ;;  %v54_v35 = vld [vmem:[#allocation2 + $0x80] sm:$0xff]  ;;  %v55_v36 = vld [vmem:[#allocation2 + $0x88] sm:$0xff] }
  0x29   :  { %164 = vmatmul.f32.vlgmr.msra.gmra.mxu0 %v544_v37  ;;  %205 = vmatmul.f32.vlgmr.msra.gmra.mxu1 %v544_v37 }
  0x2a   :  { %232 = vmatpush.msrb.mxu2 %v118_v38  ;;  %273 = vmatpush.msrb.mxu3 %v119_v39  ;;  %v48_v38 = vld [vmem:[#allocation2 + $0x50] sm:$0xff]  ;;  %v49_v39 = vld [vmem:[#allocation2 + $0x58] sm:$0xff] }
  0x2b   :  { %312 = vmatpush.msrb.mxu0 %v132_v40  ;;  %353 = vmatpush.msrb.mxu1 %v133_v41  ;;  %v42_v40 = vld [vmem:[#allocation2 + $0x20] sm:$0xff]  ;;  %v43_v41 = vld [vmem:[#allocation2 + $0x28] sm:$0xff] }
  0x2c   :  { %233 = vmatpush.msrb.mxu2 %v112_v42  ;;  %274 = vmatpush.msrb.mxu3 %v113_v43 }
  0x2d   :  { %179 = vmatmul.f32.gmra.mxu2 %v551_v44  ;;  %220 = vmatmul.f32.gmra.mxu3 %v551_v44 }
  0x2e   :  { %234 = vmatpush.msrb.mxu2 %v106_v45  ;;  %275 = vmatpush.msrb.mxu3 %v107_v46 }
  0x2f   :  { %313 = vmatpush.msrb.mxu0 %v126_v47  ;;  %354 = vmatpush.msrb.mxu1 %v127_v48 }
  0x30   :  { %235 = vmatpush.msrb.mxu2 %v100_v49  ;;  %276 = vmatpush.msrb.mxu3 %v101_v50 }
  0x31   :  { %314 = vmatpush.msrb.mxu0 %v120_v51  ;;  %355 = vmatpush.msrb.mxu1 %v121_v52 }
  0x32   :  { %236 = vmatpush.msrb.mxu2 %v94_v53  ;;  %277 = vmatpush.msrb.mxu3 %v95_v54 }
  0x33   :  { %315 = vmatpush.msrb.mxu0 %v114_v55  ;;  %356 = vmatpush.msrb.mxu1 %v115_v56 }
  0x34   :  { %167 = vmatmul.f32.gmra.mxu0 %v558_v57  ;;  %208 = vmatmul.f32.gmra.mxu1 %v558_v57 }
  0x35   :  { %237 = vmatpush.msrb.mxu2 %v88_v58  ;;  %278 = vmatpush.msrb.mxu3 %v89_v59 }
  0x36   :  { %316 = vmatpush.msrb.mxu0 %v108_v60  ;;  %357 = vmatpush.msrb.mxu1 %v109_v61 }
  0x37   :  { %182 = vmatmul.f32.gmra.mxu2 %v565_v62  ;;  %223 = vmatmul.f32.gmra.mxu3 %v565_v62 }
  0x38   :  { %238 = vmatpush.msrb.mxu2 %v82_v63  ;;  %279 = vmatpush.msrb.mxu3 %v83_v0 }
  0x39   :  { %317 = vmatpush.msrb.mxu0 %v102_v1  ;;  %358 = vmatpush.msrb.mxu1 %v103_v2 }
  0x3a   :  { %239 = vmatpush.msrb.mxu2 %v76_v3  ;;  %280 = vmatpush.msrb.mxu3 %v77_v4 }
  0x3b   :  { %318 = vmatpush.msrb.mxu0 %v96_v5  ;;  %359 = vmatpush.msrb.mxu1 %v97_v6 }
  0x3c   :  { %240 = vmatpush.msrb.mxu2 %v70_v7  ;;  %281 = vmatpush.msrb.mxu3 %v71_v8 }
  0x3d   :  { %319 = vmatpush.msrb.mxu0 %v90_v9  ;;  %360 = vmatpush.msrb.mxu1 %v91_v10 }
  0x3e   :  { %170 = vmatmul.f32.gmra.mxu0 %v572_v11  ;;  %211 = vmatmul.f32.gmra.mxu1 %v572_v11 }
  0x3f   :  { %241 = vmatpush.msrb.mxu2 %v64_v12  ;;  %282 = vmatpush.msrb.mxu3 %v65_v13 }
  0x40   :  { %320 = vmatpush.msrb.mxu0 %v84_v14  ;;  %361 = vmatpush.msrb.mxu1 %v85_v15 }
  0x41   :  { %185 = vmatmul.f32.gmra.mxu2 %v579_v16  ;;  %226 = vmatmul.f32.gmra.mxu3 %v579_v16 }
  0x42   :  { %242 = vmatpush.msrb.mxu2 %v58_v17  ;;  %283 = vmatpush.msrb.mxu3 %v59_v18 }
  0x43   :  { %321 = vmatpush.msrb.mxu0 %v78_v19  ;;  %362 = vmatpush.msrb.mxu1 %v79_v20 }
  0x44   :  { %243 = vmatpush.msrb.mxu2 %v52_v21  ;;  %284 = vmatpush.msrb.mxu3 %v53_v22 }
  0x45   :  { %322 = vmatpush.msrb.mxu0 %v72_v23  ;;  %363 = vmatpush.msrb.mxu1 %v73_v24 }
  0x46   :  { %244 = vmatpush.msrb.mxu2 %v46_v25  ;;  %285 = vmatpush.msrb.mxu3 %v47_v26 }
  0x47   :  { %323 = vmatpush.msrb.mxu0 %v66_v27  ;;  %364 = vmatpush.msrb.mxu1 %v67_v28 }
  0x48   :  { %173 = vmatmul.f32.gmra.mxu0 %v33_v29  ;;  %214 = vmatmul.f32.gmra.mxu1 %v33_v29 }
  0x49   :  { %245 = vmatpush.msrb.mxu2 %v40_v30  ;;  %286 = vmatpush.msrb.mxu3 %v41_v31 }
  0x4a   :  { %324 = vmatpush.msrb.mxu0 %v60_v33  ;;  %365 = vmatpush.msrb.mxu1 %v61_v34 }
  0x4b   :  { %246 = vmatmul.f32.vlgmr.msrb.gmra.mxu2 %v544_v37  ;;  %287 = vmatmul.f32.vlgmr.msrb.gmra.mxu3 %v544_v37 }
  0x4c   :  { %325 = vmatpush.msrb.mxu0 %v54_v35  ;;  %366 = vmatpush.msrb.mxu1 %v55_v36 }
  0x4e   :  { %326 = vmatpush.msrb.mxu0 %v48_v38  ;;  %367 = vmatpush.msrb.mxu1 %v49_v39 }
  0x50   :  { %327 = vmatpush.msrb.mxu0 %v42_v40  ;;  %368 = vmatpush.msrb.mxu1 %v43_v41 }
  0x51   :  { %328 = vmatmul.f32.vlgmr.msrb.gmra.mxu0 %v544_v37  ;;  %369 = vmatmul.f32.vlgmr.msrb.gmra.mxu1 %v544_v37 }
  0x53   :  { %249 = vmatmul.f32.gmra.mxu2 %v558_v57  ;;  %290 = vmatmul.f32.gmra.mxu3 %v558_v57 }
  0x59   :  { %331 = vmatmul.f32.gmra.mxu0 %v558_v57  ;;  %372 = vmatmul.f32.gmra.mxu1 %v558_v57 }
  0x5b   :  { %252 = vmatmul.f32.gmra.mxu2 %v572_v11  ;;  %293 = vmatmul.f32.gmra.mxu3 %v572_v11 }
  0x61   :  { %334 = vmatmul.f32.gmra.mxu0 %v572_v11  ;;  %375 = vmatmul.f32.gmra.mxu1 %v572_v11 }
  0x63   :  { %255 = vmatmul.f32.gmra.mxu2 %v33_v29  ;;  %296 = vmatmul.f32.gmra.mxu3 %v33_v29 }
  0x69   :  { %337 = vmatmul.f32.gmra.mxu0 %v33_v29  ;;  %378 = vmatmul.f32.gmra.mxu1 %v33_v29 }
  0x6b   :  { %258 = vmatmul.f32.gmra.mxu2 %v537_v32  ;;  %299 = vmatmul.f32.gmra.mxu3 %v537_v32 }
  0x71   :  { %340 = vmatmul.f32.gmra.mxu0 %v537_v32  ;;  %381 = vmatmul.f32.gmra.mxu1 %v537_v32  ;;  %v134_v32 = vld [vmem:[%s803_s2] sm:$0x3f] }
  0x72   :  { %v136_v37 = vperm.slane %v134_v32, 0  ;;  %v137_v42 = vperm.slane %v134_v32, 1  ;;  %v665_v11 = vperm.slane %v134_v32, 2  ;;  %v667_v12 = vperm.slane %v134_v32, 3 }
  0x73   :  { %261 = vmatmul.f32.gmra.mxu2 %v551_v44  ;;  %302 = vmatmul.f32.gmra.mxu3 %v551_v44  ;;  %v669_v13 = vperm.slane %v134_v32, 4  ;;  %v671_v14 = vperm.slane %v134_v32, 5 }
  0x79   :  { %343 = vmatmul.f32.gmra.mxu0 %v551_v44  ;;  %384 = vmatmul.f32.gmra.mxu1 %v551_v44 }
  0x7b   :  { %264 = vmatmul.f32.gmra.mxu2 %v565_v62  ;;  %305 = vmatmul.f32.gmra.mxu3 %v565_v62 }
  0x81   :  { %346 = vmatmul.f32.gmra.mxu0 %v565_v62  ;;  %387 = vmatmul.f32.gmra.mxu1 %v565_v62 }
  0x83   :  { %267 = vmatmul.f32.gmra.mxu2 %v579_v16  ;;  %308 = vmatmul.f32.gmra.mxu3 %v579_v16 }
  0x89   :  { %349 = vmatmul.f32.gmra.mxu0 %v579_v16  ;;  %390 = vmatmul.f32.gmra.mxu1 %v579_v16 }
  0xa6   :  { %v165_v43 = vpop.f32.mrf.mxu0  ;;  %v206_v44 = vpop.f32.mrf.mxu1 }
  0xa7   :  { %v166_v45 = vadd.f32 %v165_v43, %v136_v37  ;;  %v207_v46 = vadd.f32 %v206_v44, %v137_v42 }
  0xa8   :  { %v177_v47 = vpop.f32.mrf.mxu2  ;;  %v218_v48 = vpop.f32.mrf.mxu3 }
  0xa9   :  { %394 = vst [vmem:[%s804_s3] sm:$0xff] %v166_v45  ;;  %v178_v49 = vadd.f32 %v177_v47, %v136_v37  ;;  %v219_v50 = vadd.f32 %v218_v48, %v137_v42 }
  0xaa   :  { %395 = vst [vmem:[%s804_s3 + $0x8] sm:$0xff] %v207_v46 }
  0xab   :  { %418 = vst [vmem:[%s804_s3 + $0xc0] sm:$0xff] %v178_v49 }
  0xac   :  { %419 = vst [vmem:[%s804_s3 + $0xc8] sm:$0xff] %v219_v50 }
  0xb0   :  { %v180_v51 = vpop.f32.mrf.mxu2  ;;  %v221_v52 = vpop.f32.mrf.mxu3 }
  0xb1   :  { %v168_v53 = vpop.f32.mrf.mxu0  ;;  %v181_v54 = vadd.f32 %v180_v51, %v136_v37  ;;  %v209_v55 = vpop.f32.mrf.mxu1  ;;  %v222_v58 = vadd.f32 %v221_v52, %v137_v42 }
  0xb2   :  { %v169_v56 = vadd.f32 %v168_v53, %v136_v37  ;;  %v210_v57 = vadd.f32 %v209_v55, %v137_v42 }
  0xb3   :  { %424 = vst [vmem:[%s804_s3 + $0xf0] sm:$0xff] %v181_v54 }
  0xb4   :  { %400 = vst [vmem:[%s804_s3 + $0x30] sm:$0xff] %v169_v56 }
  0xb5   :  { %401 = vst [vmem:[%s804_s3 + $0x38] sm:$0xff] %v210_v57 }
  0xb6   :  { %425 = vst [vmem:[%s804_s3 + $0xf8] sm:$0xff] %v222_v58 }
  0xba   :  { %v183_v59 = vpop.f32.mrf.mxu2  ;;  %v224_v60 = vpop.f32.mrf.mxu3 }
  0xbb   :  { %v171_v61 = vpop.f32.mrf.mxu0  ;;  %v184_v62 = vadd.f32 %v183_v59, %v136_v37  ;;  %v212_v63 = vpop.f32.mrf.mxu1  ;;  %v225_v2 = vadd.f32 %v224_v60, %v137_v42 }
  0xbc   :  { %v172_v0 = vadd.f32 %v171_v61, %v136_v37  ;;  %v213_v1 = vadd.f32 %v212_v63, %v137_v42 }
  0xbd   :  { %430 = vst [vmem:[%s804_s3 + $0x120] sm:$0xff] %v184_v62 }
  0xbe   :  { %406 = vst [vmem:[%s804_s3 + $0x60] sm:$0xff] %v172_v0 }
  0xbf   :  { %407 = vst [vmem:[%s804_s3 + $0x68] sm:$0xff] %v213_v1 }
  0xc0   :  { %431 = vst [vmem:[%s804_s3 + $0x128] sm:$0xff] %v225_v2 }
  0xc4   :  { %v186_v3 = vpop.f32.mrf.mxu2  ;;  %v227_v4 = vpop.f32.mrf.mxu3 }
  0xc5   :  { %v174_v5 = vpop.f32.mrf.mxu0  ;;  %v187_v6 = vadd.f32 %v186_v3, %v136_v37  ;;  %v215_v7 = vpop.f32.mrf.mxu1  ;;  %v228_v10 = vadd.f32 %v227_v4, %v137_v42 }
  0xc6   :  { %v175_v8 = vadd.f32 %v174_v5, %v136_v37  ;;  %v216_v9 = vadd.f32 %v215_v7, %v137_v42 }
  0xc7   :  { %436 = vst [vmem:[%s804_s3 + $0x150] sm:$0xff] %v187_v6 }
  0xc8   :  { %412 = vst [vmem:[%s804_s3 + $0x90] sm:$0xff] %v175_v8 }
  0xc9   :  { %413 = vst [vmem:[%s804_s3 + $0x98] sm:$0xff] %v216_v9 }
  0xca   :  { %437 = vst [vmem:[%s804_s3 + $0x158] sm:$0xff] %v228_v10 }
  0xce   :  { %v247_v15 = vpop.f32.mrf.mxu2  ;;  %v288_v16 = vpop.f32.mrf.mxu3 }
  0xcf   :  { %v248_v17 = vadd.f32 %v247_v15, %v665_v11  ;;  %v289_v18 = vadd.f32 %v288_v16, %v667_v12  ;;  %v329_v19 = vpop.f32.mrf.mxu0  ;;  %v370_v20 = vpop.f32.mrf.mxu1 }
  0xd0   :  { %v330_v21 = vadd.f32 %v329_v19, %v669_v13  ;;  %v371_v22 = vadd.f32 %v370_v20, %v671_v14 }
  0xd1   :  { %396 = vst [vmem:[%s804_s3 + $0x10] sm:$0xff] %v248_v17 }
  0xd2   :  { %397 = vst [vmem:[%s804_s3 + $0x18] sm:$0xff] %v289_v18 }
  0xd3   :  { %398 = vst [vmem:[%s804_s3 + $0x20] sm:$0xff] %v330_v21 }
  0xd4   :  { %399 = vst [vmem:[%s804_s3 + $0x28] sm:$0xff] %v371_v22 }
  0xd6   :  { %v250_v23 = vpop.f32.mrf.mxu2  ;;  %v291_v24 = vpop.f32.mrf.mxu3 }
  0xd7   :  { %v251_v25 = vadd.f32 %v250_v23, %v665_v11  ;;  %v292_v26 = vadd.f32 %v291_v24, %v667_v12  ;;  %v332_v27 = vpop.f32.mrf.mxu0  ;;  %v373_v28 = vpop.f32.mrf.mxu1 }
  0xd8   :  { %v333_v29 = vadd.f32 %v332_v27, %v669_v13  ;;  %v374_v30 = vadd.f32 %v373_v28, %v671_v14 }
  0xd9   :  { %402 = vst [vmem:[%s804_s3 + $0x40] sm:$0xff] %v251_v25 }
  0xda   :  { %403 = vst [vmem:[%s804_s3 + $0x48] sm:$0xff] %v292_v26 }
  0xdb   :  { %404 = vst [vmem:[%s804_s3 + $0x50] sm:$0xff] %v333_v29 }
  0xdc   :  { %405 = vst [vmem:[%s804_s3 + $0x58] sm:$0xff] %v374_v30 }
  0xde   :  { %v253_v31 = vpop.f32.mrf.mxu2  ;;  %v294_v33 = vpop.f32.mrf.mxu3 }
  0xdf   :  { %v254_v34 = vadd.f32 %v253_v31, %v665_v11  ;;  %v295_v35 = vadd.f32 %v294_v33, %v667_v12  ;;  %v335_v36 = vpop.f32.mrf.mxu0  ;;  %v376_v38 = vpop.f32.mrf.mxu1 }
  0xe0   :  { %v336_v39 = vadd.f32 %v335_v36, %v669_v13  ;;  %v377_v40 = vadd.f32 %v376_v38, %v671_v14 }
  0xe1   :  { %408 = vst [vmem:[%s804_s3 + $0x70] sm:$0xff] %v254_v34 }
  0xe2   :  { %409 = vst [vmem:[%s804_s3 + $0x78] sm:$0xff] %v295_v35 }
  0xe3   :  { %410 = vst [vmem:[%s804_s3 + $0x80] sm:$0xff] %v336_v39 }
  0xe4   :  { %411 = vst [vmem:[%s804_s3 + $0x88] sm:$0xff] %v377_v40 }
  0xe6   :  { %v256_v41 = vpop.f32.mrf.mxu2  ;;  %v297_v32 = vpop.f32.mrf.mxu3 }
  0xe7   :  { %v257_v37 = vadd.f32 %v256_v41, %v665_v11  ;;  %v298_v42 = vadd.f32 %v297_v32, %v667_v12  ;;  %v338_v43 = vpop.f32.mrf.mxu0  ;;  %v379_v44 = vpop.f32.mrf.mxu1 }
  0xe8   :  { %v339_v45 = vadd.f32 %v338_v43, %v669_v13  ;;  %v380_v46 = vadd.f32 %v379_v44, %v671_v14 }
  0xe9   :  { %414 = vst [vmem:[%s804_s3 + $0xa0] sm:$0xff] %v257_v37 }
  0xea   :  { %415 = vst [vmem:[%s804_s3 + $0xa8] sm:$0xff] %v298_v42 }
  0xeb   :  { %416 = vst [vmem:[%s804_s3 + $0xb0] sm:$0xff] %v339_v45 }
  0xec   :  { %417 = vst [vmem:[%s804_s3 + $0xb8] sm:$0xff] %v380_v46 }
  0xee   :  { %v259_v47 = vpop.f32.mrf.mxu2  ;;  %v300_v48 = vpop.f32.mrf.mxu3 }
  0xef   :  { %v260_v49 = vadd.f32 %v259_v47, %v665_v11  ;;  %v301_v50 = vadd.f32 %v300_v48, %v667_v12  ;;  %v341_v51 = vpop.f32.mrf.mxu0  ;;  %v382_v52 = vpop.f32.mrf.mxu1 }
  0xf0   :  { %v342_v53 = vadd.f32 %v341_v51, %v669_v13  ;;  %v383_v54 = vadd.f32 %v382_v52, %v671_v14 }
  0xf1   :  { %420 = vst [vmem:[%s804_s3 + $0xd0] sm:$0xff] %v260_v49 }
  0xf2   :  { %421 = vst [vmem:[%s804_s3 + $0xd8] sm:$0xff] %v301_v50 }
  0xf3   :  { %422 = vst [vmem:[%s804_s3 + $0xe0] sm:$0xff] %v342_v53 }
  0xf4   :  { %423 = vst [vmem:[%s804_s3 + $0xe8] sm:$0xff] %v383_v54 }
  0xf6   :  { %v262_v55 = vpop.f32.mrf.mxu2  ;;  %v303_v56 = vpop.f32.mrf.mxu3 }
  0xf7   :  { %v263_v57 = vadd.f32 %v262_v55, %v665_v11  ;;  %v304_v58 = vadd.f32 %v303_v56, %v667_v12  ;;  %v344_v59 = vpop.f32.mrf.mxu0  ;;  %v385_v60 = vpop.f32.mrf.mxu1 }
  0xf8   :  { %v345_v61 = vadd.f32 %v344_v59, %v669_v13  ;;  %v386_v62 = vadd.f32 %v385_v60, %v671_v14 }
  0xf9   :  { %426 = vst [vmem:[%s804_s3 + $0x100] sm:$0xff] %v263_v57 }
  0xfa   :  { %427 = vst [vmem:[%s804_s3 + $0x108] sm:$0xff] %v304_v58 }
  0xfb   :  { %428 = vst [vmem:[%s804_s3 + $0x110] sm:$0xff] %v345_v61 }
  0xfc   :  { %429 = vst [vmem:[%s804_s3 + $0x118] sm:$0xff] %v386_v62 }
  0xfe   :  { %v265_v63 = vpop.f32.mrf.mxu2  ;;  %v306_v0 = vpop.f32.mrf.mxu3 }
  0xff   :  { %v266_v1 = vadd.f32 %v265_v63, %v665_v11  ;;  %v307_v2 = vadd.f32 %v306_v0, %v667_v12  ;;  %v347_v3 = vpop.f32.mrf.mxu0  ;;  %v388_v4 = vpop.f32.mrf.mxu1 }
 0x100   :  { %v348_v5 = vadd.f32 %v347_v3, %v669_v13  ;;  %v389_v6 = vadd.f32 %v388_v4, %v671_v14 }
 0x101   :  { %432 = vst [vmem:[%s804_s3 + $0x130] sm:$0xff] %v266_v1 }
 0x102   :  { %433 = vst [vmem:[%s804_s3 + $0x138] sm:$0xff] %v307_v2 }
 0x103   :  { %434 = vst [vmem:[%s804_s3 + $0x140] sm:$0xff] %v348_v5 }
 0x104   :  { %435 = vst [vmem:[%s804_s3 + $0x148] sm:$0xff] %v389_v6 }
 0x106   :  { %v268_v7 = vpop.f32.mrf.mxu2  ;;  %v309_v8 = vpop.f32.mrf.mxu3 }
 0x107   :  { %v269_v9 = vadd.f32 %v268_v7, %v665_v11  ;;  %v310_v10 = vadd.f32 %v309_v8, %v667_v12  ;;  %v350_v15 = vpop.f32.mrf.mxu0  ;;  %v391_v16 = vpop.f32.mrf.mxu1 }
 0x108   :  { %v351_v17 = vadd.f32 %v350_v15, %v669_v13  ;;  %v392_v18 = vadd.f32 %v391_v16, %v671_v14 }
 0x109   :  { %438 = vst [vmem:[%s804_s3 + $0x160] sm:$0xff] %v269_v9 }
 0x10a   :  { %439 = vst [vmem:[%s804_s3 + $0x168] sm:$0xff] %v310_v10 }
 0x10b   :  { %440 = vst [vmem:[%s804_s3 + $0x170] sm:$0xff] %v351_v17 }
 0x10c   :  { %441 = vst [vmem:[%s804_s3 + $0x178] sm:$0xff] %v392_v18 }
 0x10d   :  { %446 = vsyncpa [#allocation3], 1 }

</bundles_post_ra>
